<compile_context>
chip_gen: v5e
topology: v5e:2x2
jax: 0.10.0
libtpu: 0.0.40
codegen_flags: <defaults>
</compile_context>

<pallas_src>
import functools

import jax
import jax.numpy as jnp
from jax.experimental import pallas as pl
from jax.experimental.pallas import tpu as pltpu


def _synapse_kernel(spike_ref, s_ref, d_ref, syn_ref,
                    s_out_ref, d_out_ref, f_out_ref,
                    *, syn_type, alpha, dt_over_tau, dt_over_tau_d, p_d):
    # grid = (z_tiles, a_tiles); 'a' (the f_all reduction axis) is last.
    a_idx = pl.program_id(1)

    @pl.when(a_idx == 0)
    def _():
        f_out_ref[...] = jnp.zeros_like(f_out_ref)

    s = s_ref[...]                               # (ta, tn) f32
    D = d_ref[...]                               # (ta, tn) f32
    syn = syn_ref[...].astype(jnp.float32)       # (ta, tn) int8 0/1 -> f32
    spk = spike_ref[...]                         # (ta, 1) -> broadcast on lanes

    if syn_type == 'NMDA':
        ds = (alpha * spk) * (1.0 - s) - s * dt_over_tau
    else:                                        # AMPA / GABA
        ds = spk - s * dt_over_tau

    if p_d == 0.0:                               # module default p_D = 0
        dD = (1.0 - D) * dt_over_tau_d
    else:
        dD = (-p_d) * spk * D + (1.0 - D) * dt_over_tau_d

    s_new = s + syn * ds
    d_new = D + syn * dD

    s_out_ref[...] = s_new
    d_out_ref[...] = d_new
    # Cross-sublane reduce goes to the XLU (separate issue slot; kernel is
    # HBM-bandwidth bound so this is free filler).
    f_out_ref[...] += jnp.sum(syn * d_new * s_new, axis=0, keepdims=True)


def _round_up(x, m):
    return (x + m - 1) // m * m


def synapse_forward(spike, s, D, syns, *,
                    syn_type='AMPA', alpha=0.63, p_d=0.0, tau_d=600.0,
                    dt=0.1, ta=512, tn=512):
    """One forward step of SynapseNetwork. Returns (s_new, D_new, f_all)."""
    num_a, num_z = s.shape
    assert spike.shape == (num_a,)

    if syn_type == 'AMPA':
        tau = 2.0
    elif syn_type == 'NMDA':
        tau = 100.0
    elif syn_type == 'GABA':
        tau = 5.0
    else:
        raise ValueError(syn_type)

    # Clamp tile sizes for small problems while keeping (8,128) alignment.
    ta = min(ta, _round_up(num_a, 8))
    tn = min(tn, _round_up(num_z, 128))
    pad_a = _round_up(num_a, ta)
    pad_z = _round_up(num_z, tn)

    spike_f = spike.astype(jnp.float32).reshape(num_a, 1)
    s_f = s if s.dtype == jnp.float32 else s.astype(jnp.float32)
    d_f = D if D.dtype == jnp.float32 else D.astype(jnp.float32)
    syn_i8 = syns.astype(jnp.int8)               # 1 B/elem instead of 4 B/elem

    needs_pad = (pad_a, pad_z) != (num_a, num_z)
    if needs_pad:
        da, dz = pad_a - num_a, pad_z - num_z
        spike_f = jnp.pad(spike_f, ((0, da), (0, 0)))
        s_f = jnp.pad(s_f, ((0, da), (0, dz)))
        d_f = jnp.pad(d_f, ((0, da), (0, dz)))
        syn_i8 = jnp.pad(syn_i8, ((0, da), (0, dz)))   # syn=0 padding is inert

    kernel = functools.partial(
        _synapse_kernel, syn_type=syn_type, alpha=float(alpha),
        dt_over_tau=float(dt) / float(tau),
        dt_over_tau_d=float(dt) / float(tau_d), p_d=float(p_d))

    grid = (pad_z // tn, pad_a // ta)            # z (parallel) first, a (reduce) last

    n_elem = pad_a * pad_z
    cost = pl.CostEstimate(
        flops=12 * n_elem,                       # ds/dD/updates/f_all per element
        transcendentals=0,
        bytes_accessed=(4 + 4 + 1 + 4 + 4) * n_elem + 8 * pad_z + 4 * pad_a)

    s_new, d_new, f_all = pl.pallas_call(
        kernel,
        out_shape=(
            jax.ShapeDtypeStruct((pad_a, pad_z), jnp.float32),   # s
            jax.ShapeDtypeStruct((pad_a, pad_z), jnp.float32),   # D
            jax.ShapeDtypeStruct((1, pad_z), jnp.float32),       # f_all
        ),
        grid_spec=pltpu.PrefetchScalarGridSpec(
            num_scalar_prefetch=0,
            grid=grid,
            in_specs=[
                pl.BlockSpec((ta, 1), lambda j, i: (i, 0)),      # spike
                pl.BlockSpec((ta, tn), lambda j, i: (i, j)),     # s
                pl.BlockSpec((ta, tn), lambda j, i: (i, j)),     # D
                pl.BlockSpec((ta, tn), lambda j, i: (i, j)),     # syns (int8)
            ],
            out_specs=[
                pl.BlockSpec((ta, tn), lambda j, i: (i, j)),     # s_new
                pl.BlockSpec((ta, tn), lambda j, i: (i, j)),     # D_new
                pl.BlockSpec((1, tn), lambda j, i: (0, j)),      # f_all (accumulator)
            ],
        ),
        # In-place state update: s -> s_new, D -> D_new.
        input_output_aliases={1: 0, 2: 1},
        compiler_params=pltpu.CompilerParams(
            dimension_semantics=("parallel", "arbitrary")),
        cost_estimate=cost,
    )(spike_f, s_f, d_f, syn_i8)

    if needs_pad:
        s_new = s_new[:num_a, :num_z]
        d_new = d_new[:num_a, :num_z]
        f_all = f_all[:, :num_z]
    return s_new, d_new, f_all.reshape(num_z)


def _reference(spike, s, D, syns, *, syn_type, alpha, tau, dt, p_d, tau_d):
    syn = syns.astype(jnp.float32)
    spk = spike.reshape(-1, 1).astype(jnp.float32)
    if syn_type == 'NMDA':
        ds = alpha * (1.0 - s) * spk - s / tau * dt
    else:
        ds = spk - s / tau * dt
    dD = -p_d * spk * D + (1.0 - D) * dt / tau_d
    s_new = s + syn * ds
    d_new = D + syn * dD
    f_all = jnp.sum(syn * d_new * s_new, axis=0)
    return s_new, d_new, f_all


if __name__ == "__main__":
    conP, dt = 0.05, 0.1
    key = jax.random.PRNGKey(0)

    # --- test 1: non-tile-aligned shape (exercises padding), AMPA, p_D = 0 ---
    num_a, num_z = 500, 500
    k_syn, k_spk, k_s = jax.random.split(jax.random.fold_in(key, 1), 3)
    syns = jax.random.uniform(k_syn, (num_a, num_z)) < conP          # bool mask
    s0 = 0.1 * jax.random.uniform(k_s, (num_a, num_z), dtype=jnp.float32)
    D0 = jnp.ones((num_a, num_z), dtype=jnp.float32)
    spike = (jax.random.uniform(k_spk, (num_a,)) < 0.2).astype(jnp.float32)

    s_new, d_new, f_all = synapse_forward(
        spike, s0, D0, syns, syn_type='AMPA', alpha=0.63,
        p_d=0.0, tau_d=600.0, dt=dt, ta=256, tn=256)
    jax.block_until_ready((s_new, d_new, f_all))

    s_ref, d_ref, f_ref = _reference(
        spike, s0, D0, syns, syn_type='AMPA', alpha=0.63,
        tau=2.0, dt=dt, p_d=0.0, tau_d=600.0)
    assert jnp.allclose(s_new, s_ref, atol=1e-5)
    assert jnp.allclose(d_new, d_ref, atol=1e-5)
    assert jnp.allclose(f_all, f_ref, atol=1e-4)

    # --- test 2: aligned shape, default (large) tiles, NMDA, p_D != 0 ---
    num_a, num_z = 512, 512
    k_syn, k_spk, k_s = jax.random.split(jax.random.fold_in(key, 2), 3)
    syns = jax.random.uniform(k_syn, (num_a, num_z)) < conP
    s0 = 0.1 * jax.random.uniform(k_s, (num_a, num_z), dtype=jnp.float32)
    D0 = jnp.ones((num_a, num_z), dtype=jnp.float32)
    spike = (jax.random.uniform(k_spk, (num_a,)) < 0.2).astype(jnp.float32)

    s_new, d_new, f_all = synapse_forward(
        spike, s0, D0, syns, syn_type='NMDA', alpha=0.63,
        p_d=0.3, tau_d=600.0, dt=dt)
    jax.block_until_ready((s_new, d_new, f_all))

    s_ref, d_ref, f_ref = _reference(
        spike, s0, D0, syns, syn_type='NMDA', alpha=0.63,
        tau=100.0, dt=dt, p_d=0.3, tau_d=600.0)
    assert jnp.allclose(s_new, s_ref, atol=1e-5)
    assert jnp.allclose(d_new, d_ref, atol=1e-5)
    assert jnp.allclose(f_all, f_ref, atol=1e-4)

    print("KERNEL_OK")
</pallas_src>

<mosaic_0001>
module attributes {stable_mosaic.version = 11 : i64} {
  func.func @_synapse_kernel(%arg0: i32, %arg1: i32, %arg2: memref<256x1xf32, #tpu.memory_space<vmem>>, %arg3: memref<256x256xf32, #tpu.memory_space<vmem>>, %arg4: memref<256x256xf32, #tpu.memory_space<vmem>>, %arg5: memref<256x256xi8, #tpu.memory_space<vmem>>, %arg6: memref<256x256xf32, #tpu.memory_space<vmem>>, %arg7: memref<256x256xf32, #tpu.memory_space<vmem>>, %arg8: memref<1x256xf32, #tpu.memory_space<vmem>>) attributes {dimension_semantics = [#tpu.dimension_semantics<parallel>, #tpu.dimension_semantics<arbitrary>], iteration_bounds = array<i64: 2, 2>, scalar_prefetch = 0 : i64, scratch_operands = 0 : i64, tpu.core_type = #tpu.core_type<tc>, window_params = [{transform_indices = @transform_0, window_bounds = array<i64: 256, 1>}, {transform_indices = @transform_1, window_bounds = array<i64: 256, 256>}, {transform_indices = @transform_2, window_bounds = array<i64: 256, 256>}, {transform_indices = @transform_3, window_bounds = array<i64: 256, 256>}, {transform_indices = @transform_4, window_bounds = array<i64: 256, 256>}, {transform_indices = @transform_5, window_bounds = array<i64: 256, 256>}, {transform_indices = @transform_6, window_bounds = array<i64: 1, 256>}]} {
    %c0_i32 = arith.constant 0 : i32
    %0 = arith.cmpi eq, %arg1, %c0_i32 : i32
    %1 = arith.extui %0 : i1 to i32
    %c0_i32_0 = arith.constant 0 : i32
    %2 = arith.cmpi ne, %1, %c0_i32_0 : i32
    scf.if %2 {
      %cst_19 = arith.constant 0.000000e+00 : f32
      %29 = vector.broadcast %cst_19 : f32 to vector<1x256xf32>
      %c0_20 = arith.constant 0 : index
      %c0_21 = arith.constant 0 : index
      %30 = vector.load %arg8[%c0_20, %c0_21] : memref<1x256xf32, #tpu.memory_space<vmem>>, vector<1x256xf32>
      tpu.vector_store %arg8[%c0_20, %c0_21], %29 {strides = array<i32>} : memref<1x256xf32, #tpu.memory_space<vmem>>, vector<1x256xf32>,
    } else {
    }
    %c0 = arith.constant 0 : index
    %c0_1 = arith.constant 0 : index
    %3 = vector.load %arg3[%c0, %c0_1] : memref<256x256xf32, #tpu.memory_space<vmem>>, vector<256x256xf32>
    %c0_2 = arith.constant 0 : index
    %c0_3 = arith.constant 0 : index
    %4 = vector.load %arg4[%c0_2, %c0_3] : memref<256x256xf32, #tpu.memory_space<vmem>>, vector<256x256xf32>
    %c0_4 = arith.constant 0 : index
    %c0_5 = arith.constant 0 : index
    %5 = vector.load %arg5[%c0_4, %c0_5] : memref<256x256xi8, #tpu.memory_space<vmem>>, vector<256x256xi8>
    %6 = arith.sitofp %5 : vector<256x256xi8> to vector<256x256xf32>
    %c0_6 = arith.constant 0 : index
    %c0_7 = arith.constant 0 : index
    %7 = vector.load %arg2[%c0_6, %c0_7] : memref<256x1xf32, #tpu.memory_space<vmem>>, vector<256x1xf32>
    %cst = arith.constant 5.000000e-02 : f32
    %8 = vector.broadcast %cst : f32 to vector<256x256xf32>
    %9 = arith.mulf %3, %8 : vector<256x256xf32>
    %10 = vector.broadcast %7 : vector<256x1xf32> to vector<256x256xf32>
    %11 = arith.subf %10, %9 : vector<256x256xf32>
    %cst_8 = arith.constant 1.000000e+00 : f32
    %12 = vector.broadcast %cst_8 : f32 to vector<256x256xf32>
    %13 = arith.subf %12, %4 : vector<256x256xf32>
    %cst_9 = arith.constant 1.66666665E-4 : f32
    %14 = vector.broadcast %cst_9 : f32 to vector<256x256xf32>
    %15 = arith.mulf %13, %14 : vector<256x256xf32>
    %16 = arith.mulf %6, %11 : vector<256x256xf32>
    %17 = arith.addf %3, %16 : vector<256x256xf32>
    %18 = arith.mulf %6, %15 : vector<256x256xf32>
    %19 = arith.addf %4, %18 : vector<256x256xf32>
    %c0_10 = arith.constant 0 : index
    %c0_11 = arith.constant 0 : index
    %20 = vector.load %arg6[%c0_10, %c0_11] : memref<256x256xf32, #tpu.memory_space<vmem>>, vector<256x256xf32>
    tpu.vector_store %arg6[%c0_10, %c0_11], %17 {strides = array<i32>} : memref<256x256xf32, #tpu.memory_space<vmem>>, vector<256x256xf32>,
    %c0_12 = arith.constant 0 : index
    %c0_13 = arith.constant 0 : index
    %21 = vector.load %arg7[%c0_12, %c0_13] : memref<256x256xf32, #tpu.memory_space<vmem>>, vector<256x256xf32>
    tpu.vector_store %arg7[%c0_12, %c0_13], %19 {strides = array<i32>} : memref<256x256xf32, #tpu.memory_space<vmem>>, vector<256x256xf32>,
    %c0_14 = arith.constant 0 : index
    %c0_15 = arith.constant 0 : index
    %22 = vector.load %arg8[%c0_14, %c0_15] : memref<1x256xf32, #tpu.memory_space<vmem>>, vector<1x256xf32>
    %23 = arith.mulf %6, %19 : vector<256x256xf32>
    %24 = arith.mulf %23, %17 : vector<256x256xf32>
    %cst_16 = arith.constant dense<0.000000e+00> : vector<256xf32>
    %25 = vector.multi_reduction <add>, %24, %cst_16 [0] : vector<256x256xf32> to vector<256xf32>
    %26 = vector.shape_cast %25 : vector<256xf32> to vector<1x256xf32>
    %27 = arith.addf %22, %26 : vector<1x256xf32>
    %c0_17 = arith.constant 0 : index
    %c0_18 = arith.constant 0 : index
    %28 = vector.load %arg8[%c0_17, %c0_18] : memref<1x256xf32, #tpu.memory_space<vmem>>, vector<1x256xf32>
    tpu.vector_store %arg8[%c0_17, %c0_18], %27 {strides = array<i32>} : memref<1x256xf32, #tpu.memory_space<vmem>>, vector<1x256xf32>,
    return
  }
  func.func @transform_0(%arg0: i32, %arg1: i32) -> (i32, i32) {
    %c0_i32 = arith.constant 0 : i32
    %c0_i32_0 = arith.constant 0 : i32
    return %arg1, %c0_i32 : i32, i32
  }
  func.func @transform_1(%arg0: i32, %arg1: i32) -> (i32, i32) {
    %c0_i32 = arith.constant 0 : i32
    return %arg1, %arg0 : i32, i32
  }
  func.func @transform_2(%arg0: i32, %arg1: i32) -> (i32, i32) {
    %c0_i32 = arith.constant 0 : i32
    return %arg1, %arg0 : i32, i32
  }
  func.func @transform_3(%arg0: i32, %arg1: i32) -> (i32, i32) {
    %c0_i32 = arith.constant 0 : i32
    return %arg1, %arg0 : i32, i32
  }
  func.func @transform_4(%arg0: i32, %arg1: i32) -> (i32, i32) {
    %c0_i32 = arith.constant 0 : i32
    return %arg1, %arg0 : i32, i32
  }
  func.func @transform_5(%arg0: i32, %arg1: i32) -> (i32, i32) {
    %c0_i32 = arith.constant 0 : i32
    return %arg1, %arg0 : i32, i32
  }
  func.func @transform_6(%arg0: i32, %arg1: i32) -> (i32, i32) {
    %c0_i32 = arith.constant 0 : i32
    %c0_i32_0 = arith.constant 0 : i32
    return %c0_i32, %arg0 : i32, i32
  }
}

</mosaic_0001>

<bundles_post_ra>
// kernel: tpu_custom_call.1
= control target key start
LH: loop header
LB: loop body
LE: loop exit
PB: predicated region body
PF: predicated region fallthrough
CT: control target
= control target key end

     0   :  { %s3708_s0 = inlined_call_operand.vmem [shape: f32[512,1], index: 0, kind: input, shape index: {}]   ;;  %s3709_s1 = inlined_call_operand.hbm [shape: f32[512,512], index: 1, kind: input, shape index: {}, may-alias: {1,4}]   ;;  %s3710_s2 = inlined_call_operand.hbm [shape: f32[512,512], index: 2, kind: input, shape index: {}, may-alias: {2,5}]   ;;  %s3711_s3 = inlined_call_operand.vmem [shape: s8[512,512], index: 3, kind: input, shape index: {}]   ;;  %s3712_s4 = inlined_call_operand.hbm [shape: f32[512,512], index: 4, kind: output, shape index: {0}, may-alias: {1,4}]   ;;  %s3713_s5 = inlined_call_operand.hbm [shape: f32[512,512], index: 5, kind: output, shape index: {1}, may-alias: {2,5}]   ;;  %s3714_s6 = inlined_call_operand.hbm [shape: f32[1,512], index: 6, kind: output, shape index: {2}]  }
   0x1   :  { %3752 = sst [smem:[#allocation55_spill]] %s3712_s4 }
   0x2   :  { %3753 = sst [smem:[#allocation56_spill]] %s3713_s5 }
   0x3   :  { %3754 = sst [smem:[#allocation57_spill]] %s3714_s6 }
   0x4   :  { %12 = vsyncpa [#allocation3], 0 }
   0x5   :  { %14 = vsyncpa [#allocation3 + $0x1], 0 }
   0x6   :  { %15 = vsyncpa [#allocation6], 0 }
   0x7   :  { %17 = vsyncpa [#allocation6 + $0x1], 0 }
   0x8   :  { %18 = vsyncpa [#allocation4], 0 }
   0x9   :  { %20 = vsyncpa [#allocation4 + $0x1], 0 }
   0xa   :  { %21 = vsyncpa [#allocation10], 0 }
   0xb   :  { %23 = vsyncpa [#allocation10 + $0x1], 0  ;;  %s2535_s21 = smov 0   ;;  %s2537_s22 = smov 0  }
   0xc   :  { %s2539_s23 = smov 0   ;;  %s2541_s24 = smov 0  }
   0xd   :  { %s2543_s25 = smov 0   ;;  %s2545_s26 = smov 0  }
   0xe   :  { %s2547_s27 = smov 0   ;;  %s2549_s28 = smov 0  }
   0xf   :  { %s2551_s29 = smov 0   ;;  %s2553_s30 = smov 0  }
  0x10   :  { %s2555_s7 = smov 0  }
  0x11 LB: > { %3755 = sst [smem:[#allocation17_spill]] %s2458_s23  ;;  %s2591_s8 = sadd.s32 4294967295, %s2490_s7   ;;  %s2490_s7 = sphi %s2555_s7, %s29_s7   ;;  %s2486_s30 = sphi %s2553_s30, %s3841_s30   ;;  %s2482_s29 = sphi %s2551_s29, %s3848_s29   ;;  %s2478_s28 = sphi %s2549_s28, %s3839_s28   ;;  %s2474_s27 = sphi %s2547_s27, %s3847_s27   ;;  %s2470_s26 = sphi %s2545_s26, %s3846_s26   ;;  %s2466_s25 = sphi %s2543_s25, %s3845_s25   ;;  %s2462_s24 = sphi %s2541_s24, %s3844_s24   ;;  %s2458_s23 = sphi %s2539_s23, %s3836_s23   ;;  %s2454_s22 = sphi %s2537_s22, %s3843_s22   ;;  %s2450_s21 = sphi %s2535_s21, %s3842_s21  }
  0x12   : > { %3756 = sst [smem:[#allocation18_spill]] %s2462_s24  ;;  %s3718_s9 = sadd.s32 4294967294, %s2490_s7  }
  0x13   : > { %3757 = sst [smem:[#allocation19_spill]] %s2470_s26  ;;  %s38_s10 = sadd.s32 1, %s2482_s29 }
  0x14   : > { %3758 = sst [smem:[#allocation20_spill]] %s2486_s30  ;;  %s41_s11 = sadd.s32 1, %s2486_s30 }
  0x15   : > { %3759 = sst [smem:[#allocation21_spill]] %s2591_s8  ;;  %p39_p0 = scmp.ge.s32.totalorder %s38_s10, 2 }
  0x16   : > { %s76_s12 = sadd.s32 1, %s2470_s26  ;;  %p83_p1 = scmp.ne.s32.totalorder %s2470_s26, %s2466_s25 }
  0x17   : > { %p84_p2 = scmp.eq.s32.totalorder %s2490_s7, 0  ;;  %s3850_s10 = smov (%p39_p0, %s38_s10), 0 }
  0x18   : > { %3760 = sst [smem:[#allocation22_spill]] %s3850_s10  ;;  %s3852_s11 = smov (!%p39_p0, %s41_s11), %s2486_s30 }
  0x19   : > { %s71_s13 = ssub.s32 %s2482_s29, %s3850_s10  ;;  %p2605_p3 = por %p84_p2, %p83_p1 }
  0x1a   : > { %p43_p4 = scmp.ge.s32.totalorder %s3852_s11, 2  ;;  %p89_p5 = scmp.ne.s32.totalorder %s2466_s25, %s2462_s24 }
  0x1b   : > { %p90_p6 = scmp.eq.s32.totalorder %s2591_s8, 0  ;;  %p171_p7 = scmp.eq.s32.totalorder %s2591_s8, 3 }
  0x1c   : > { %s3854_s11 = smov (%p43_p4, %s3852_s11), 0  ;;  %p177_p10 = scmp.eq.s32.totalorder %s3718_s9, 3 }
  0x1d   : > { %3762 = sst [smem:[#allocation23_spill]] %s3854_s11  ;;  %p2615_p8 = por %p90_p6, %p89_p5 }
  0x1e   : > { %p2621_p9 = por %p171_p7, %p83_p1  ;;  %s72_s17 = ssub.s32 %s2486_s30, %s3854_s11 }
  0x1f   : > { %s73_s18 = sor.u32 %s72_s17, %s71_s13  ;;  %p212_p11 = scmp.eq.s32.totalorder %s72_s17, 0 }
  0x20   : > { %s3764_s16 = scalar_select %p2621_p9, 1, 0 }
  0x21   : > { %p74_p12 = scmp.eq.s32.totalorder %s73_s18, 0  ;;  %p2629_p13 = por %p177_p10, %p89_p5 }
  0x22   : > { %3765 = sst [smem:[#allocation24_spill]] %s3764_s16  ;;  %s214_s20 = sadd.s32 1, %s2458_s23 }
  0x23   : > { %s3766_s19 = scalar_select %p2629_p13, 1, 0 }
  0x24   : > { %p224_p0 = scmp.ne.s32.totalorder %s2458_s23, %s2454_s22  ;;  %p230_p2 = scmp.ne.s32.totalorder %s2454_s22, %s2450_s21 }
  0x25   : > { %3767 = sst [smem:[#allocation25_spill]] %s3766_s19  ;;  %p2075_p5 = scmp.ge.s32.totalorder %s2490_s7, 4 }
  0x26   : > { %s2637_s10 = scalar_select %p74_p12, %s2470_s26, %s76_s12  }
  0x27   : > { %s2640_s24 = scalar_select %p212_p11, %s2458_s23, %s214_s20  }
  0x28   : > { %3768 = sst [smem:[#allocation26_spill]] %s2637_s10  ;;  %p2644_p1 = por %p224_p0, %p171_p7 }
  0x29   : > { %3769 = sst [smem:[#allocation27_spill]] %s2640_s24  ;;  %p2650_p4 = por %p230_p2, %p177_p10 }
  0x2a   : > { %s3770_s6 = scalar_select %p2644_p1, 1, 0 }
  0x2b   : > { %s3772_s13 = scalar_select %p2650_p4, 1, 0 }
  0x2c   : > { %3771 = sst [smem:[#allocation28_spill]] %s3770_s6  ;;  %247 = sbr.rel (%p2075_p5) target bundleno = 79 (0x4f), region = 16 }
  0x2d   : > { %3773 = sst [smem:[#allocation29_spill]] %s3772_s13  ;;  %s2656_s12 = sand.u32 (!%p2075_p5), 1, %s2470_s26  }
  0x2e   : > { %s2078_s17 = sshll.u32 (!%p2075_p5), %s2486_s30, 1  ;;  %s2076_s18 = sshll.u32 (!%p2075_p5), %s2656_s12, 9 }
  0x2f   : > { %s2115_s20 = sshll.u32 (!%p2075_p5), %s2482_s29, 7  ;;  %s264_s21 = scalar_lea.vmem (!%p2075_p5), [#allocation2], %s2076_s18 }
  0x30   : > { %s270_s9 = sadd.s32 (!%p2075_p5), %s2115_s20, %s2078_s17  ;;  %s275_s11 = sshll.u32 (!%p2075_p5), %s264_s21, 4  ;;  %s276_s11 = int_to_ptr.vmem [resolvable:$true] %s275_s11 }
  0x31   : > { %s2080_s10 = sshll.u32 %s270_s9, 3  ;;  %s261_s26 = scalar_lea.sflag [#allocation3], %s2656_s12 }
  0x32   : > { %s272_s13 = scalar_lea.hbm %s3709_s1, %s2080_s10  ;;  %s2492_s6 = smov 512  }
  0x33   : > { %s273_s19 = sshll.u32 %s272_s13, 4  ;;  %s2493_s16 = smov 256   ;;  %s274_s19 = int_to_ptr.hbm [resolvable:$true] %s273_s19 }
  0x34   : > { %s2494_s4 = smov 16   ;;  %s297_s21 = scalar_lea.hbm %s3710_s2, %s2080_s10 }
  0x35   : > { %2120 = dma.hbm_to_vmem [thread:$0]  (%p2605_p3), %s274_s19, 8192, %s276_s11, %s261_s26, %s2492_s6, %s2493_s16, %s2494_s4  }
  0x36   : > { %s289_s9 = scalar_lea.vmem [#allocation5], %s2076_s18  ;;  %s298_s8 = sshll.u32 %s297_s21, 4  ;;  %s299_s8 = int_to_ptr.hbm [resolvable:$true] %s298_s8 }
  0x37   : > { %s300_s5 = sshll.u32 %s289_s9, 4  ;;  %s286_s23 = scalar_lea.sflag [#allocation6], %s2656_s12  ;;  %s301_s5 = int_to_ptr.vmem [resolvable:$true] %s300_s5 }
  0x38   : > { %2121 = dma.hbm_to_vmem [thread:$0]  (%p2605_p3), %s299_s8, 8192, %s301_s5, %s286_s23, %s2492_s6, %s2493_s16, %s2494_s4  }
  0x39   : > { %309 = sbr.rel (!%p2605_p3) target bundleno = 79 (0x4f), region = 32  ;;  %s2086_s24 = sshll.u32 (%p2605_p3), %s2656_s12, 7 }
  0x3a   : > { %s2117_s13 = sshll.u32 (%p2605_p3), %s2482_s29, 5  ;;  %s313_s4 = scalar_lea.vmem (%p2605_p3), [#allocation7], %s2086_s24 }
  0x3b   : > { %s317_s26 = sadd.s32 (%p2605_p3), %s2117_s13, %s2078_s17 }
  0x3c   : > { %s2090_s11 = sshll.u32 (%p2605_p3), %s317_s26, 3 }
  0x3d   : > { %s2680_s10 = scalar_lea.vmem (%p2605_p3), %s3711_s3, %s2090_s11 }
  0x3e   : > { %v332_v0 = vld [vmem:[%s2680_s10] sm:$0xff]  ;;  %v334_v1 = vld [vmem:[%s2680_s10 + $0x8] sm:$0xff] }
  0x3f   : > { %v336_v2 = vld [vmem:[%s2680_s10 + $0x20] sm:$0xff]  ;;  %333 = vst [vmem:[%s313_s4] sm:$0xff] %v332_v0  ;;  %v338_v3 = vld [vmem:[%s2680_s10 + $0x28] sm:$0xff] }
  0x40   : > { %335 = vst [vmem:[%s313_s4 + $0x8] sm:$0xff] %v334_v1  ;;  %v340_v4 = vld [vmem:[%s2680_s10 + $0x40] sm:$0xff]  ;;  %v342_v5 = vld [vmem:[%s2680_s10 + $0x48] sm:$0xff] }
  0x41   : > { %337 = vst [vmem:[%s313_s4 + $0x10] sm:$0xff] %v336_v2  ;;  %v344_v6 = vld [vmem:[%s2680_s10 + $0x60] sm:$0xff]  ;;  %v346_v7 = vld [vmem:[%s2680_s10 + $0x68] sm:$0xff] }
  0x42   : > { %339 = vst [vmem:[%s313_s4 + $0x18] sm:$0xff] %v338_v3  ;;  %v348_v8 = vld [vmem:[%s2680_s10 + $0x80] sm:$0xff]  ;;  %v350_v9 = vld [vmem:[%s2680_s10 + $0x88] sm:$0xff] }
  0x43   : > { %341 = vst [vmem:[%s313_s4 + $0x20] sm:$0xff] %v340_v4  ;;  %v352_v10 = vld [vmem:[%s2680_s10 + $0xa0] sm:$0xff]  ;;  %v354_v11 = vld [vmem:[%s2680_s10 + $0xa8] sm:$0xff] }
  0x44   : > { %343 = vst [vmem:[%s313_s4 + $0x28] sm:$0xff] %v342_v5  ;;  %v356_v12 = vld [vmem:[%s2680_s10 + $0xc0] sm:$0xff]  ;;  %v358_v13 = vld [vmem:[%s2680_s10 + $0xc8] sm:$0xff] }
  0x45   : > { %345 = vst [vmem:[%s313_s4 + $0x30] sm:$0xff] %v344_v6  ;;  %v360_v14 = vld [vmem:[%s2680_s10 + $0xe0] sm:$0xff]  ;;  %v362_v15 = vld [vmem:[%s2680_s10 + $0xe8] sm:$0xff] }
  0x46   : > { %347 = vst [vmem:[%s313_s4 + $0x38] sm:$0xff] %v346_v7 }
  0x47   : > { %349 = vst [vmem:[%s313_s4 + $0x40] sm:$0xff] %v348_v8 }
  0x48   : > { %351 = vst [vmem:[%s313_s4 + $0x48] sm:$0xff] %v350_v9 }
  0x49   : > { %353 = vst [vmem:[%s313_s4 + $0x50] sm:$0xff] %v352_v10 }
  0x4a   : > { %355 = vst [vmem:[%s313_s4 + $0x58] sm:$0xff] %v354_v11 }
  0x4b   : > { %357 = vst [vmem:[%s313_s4 + $0x60] sm:$0xff] %v356_v12 }
  0x4c   : > { %359 = vst [vmem:[%s313_s4 + $0x68] sm:$0xff] %v358_v13 }
  0x4d   : > { %361 = vst [vmem:[%s313_s4 + $0x70] sm:$0xff] %v360_v14 }
  0x4e   : > { %363 = vst [vmem:[%s313_s4 + $0x78] sm:$0xff] %v362_v15 }
  0x4f PF: > { %p2091_p3 = scmp.ge.s32.totalorder %s2490_s7, 1  ;;  %p368_p6 = scmp.lt.s32.totalorder %s2490_s7, 5 }
  0x51   : > { %p369_p7 = pnand %p2091_p3, %p368_p6 }
  0x53   : > { %372 = sbr.rel (%p369_p7) target bundleno = 442 (0x1ba), region = 55 }
  0x58   : > { %s2701_s5 = sand.u32 1, %s2466_s25  }
  0x59   : > { %s2092_s6 = sshll.u32 %s2701_s5, 9  ;;  %s375_s8 = scalar_lea.sflag [#allocation3], %s2701_s5 }
  0x5a   : > { %s2705_s14 = scalar_lea.vmem [#allocation2], %s2092_s6 }
  0x5b   : > { %2429 = dma.done.wait (%p2615_p8), %s375_s8, 8192  }
  0x5c   : > { %2431 = vsyncadd (%p2615_p8), %s375_s8, 4294959104  ;;  %s385_s16 = scalar_lea.sflag [#allocation6], %s2701_s5  ;;  %s2712_s12 = scalar_lea.vmem [#allocation5], %s2092_s6 }
  0x5d   : > { %2433 = dma.done.wait (%p2615_p8), %s385_s16, 8192  }
  0x5e   : > { %2435 = vsyncadd (%p2615_p8), %s385_s16, 4294959104  ;;  %s2094_s17 = sshll.u32 %s2701_s5, 7  ;;  %s446_s18 = sand.u32 1, %s2454_s22  }
  0x5f   : > { %s2098_s20 = sshll.u32 %s2474_s27, 5  ;;  %s2097_s21 = sshll.u32 %s446_s18, 1 }
  0x60   : > { %p450_p10 = scmp.lt.s32.totalorder %s2098_s20, 63  ;;  %s2726_s26 = scalar_lea.vmem [#allocation7], %s2094_s17 }
  0x61   : > { %s2728_s11 = scalar_lea.vmem [#allocation8], %s2092_s6  ;;  %s2730_s15 = scalar_lea.vmem [#allocation9], %s2092_s6 }
  0x62   : > { %s3856_s20 = smov (!%p450_p10, %s2098_s20), 63  ;;  %s2732_s19 = scalar_lea.vmem [#allocation11], %s2097_s21 }
  0x63   : > { %s2099_s9 = sshll.u32 %s3856_s20, 3  ;;  %p2100_p8 = scmp.ne.s32.totalorder %s2474_s27, 0 }
  0x64   : > { %s2724_s13 = scalar_lea.vmem %s3708_s0, %s2099_s9 }
  0x65   : > { %469 = sbr.rel (%p2100_p8) target bundleno = 110 (0x6e), region = 71 }
  0x6a   : > { %v470_v16 = vlaneseq  ;;  %v2495_v17 = vmov 0.0  }
  0x6c   : > { %vm472_vm0 = vcmp.lt.s32.totalorder %v470_v16, 256 }
  0x6d   : > { %474 = vst.msk [vmem:[%s2732_s19] sm:$0x3] %vm472_vm0, %v2495_v17 }
  0x6e PF: > { %v751_v18 = vld [vmem:[%s2724_s13 + $0x20] sm:$0xff]  ;;  %v749_v19 = vld [vmem:[%s2724_s13 + $0x10] sm:$0xff]  ;;  %v2496_v21 = vmov 0   ;;  %v752_v22 = vld [vmem:[%s2724_s13 + $0x28] sm:$0xff]  ;;  %s2105_s30 = sshll.u32 %s2478_s28, 1  ;;  %s2118_s10 = sshll.u32 %s2474_s27, 7 }
  0x6f   : > { %v747_v20 = vld [vmem:[%s2724_s13] sm:$0xff]  ;;  %2239 = vset.pattern.permute.xlu2 %v2496_v21  ;;  %2238 = vset.pattern.permute.xlu1 %v2496_v21  ;;  %v750_v23 = vld [vmem:[%s2724_s13 + $0x18] sm:$0xff]  ;;  %v748_v24 = vld [vmem:[%s2724_s13 + $0x8] sm:$0xff]  ;;  %s3570_s27 = sadd.s32 %s2118_s10, %s2105_s30  ;;  %s3824_s4 = sld [smem:[#allocation21_spill]] }
  0x70   : > { %2237 = vset.pattern.permute.xlu0 %v2496_v21  ;;  %865 = vperm.xlu2 %2239, %v751_v18   ;;  %v755_v25 = vld [vmem:[%s2724_s13 + $0x40] sm:$0xff]  ;;  %v754_v26 = vld [vmem:[%s2724_s13 + $0x38] sm:$0xff]  ;;  %v753_v27 = vld [vmem:[%s2724_s13 + $0x30] sm:$0xff]  ;;  %s2107_s6 = sshll.u32 %s3570_s27, 3  ;;  %s3826_s21 = sld [smem:[#allocation55_spill]] }
  0x71   : > { %855 = vperm.xlu1 %2238, %v749_v19   ;;  %845 = vperm.xlu0 %2237, %v747_v20   ;;  %v758_v28 = vld [vmem:[%s2724_s13 + $0x58] sm:$0xff]  ;;  %v757_v29 = vld [vmem:[%s2724_s13 + $0x50] sm:$0xff]  ;;  %v756_v30 = vld [vmem:[%s2724_s13 + $0x48] sm:$0xff]  ;;  %s1840_s24 = sshll.u32 %s2730_s15, 4  ;;  %s3601_s24 = int_to_ptr.vmem [resolvable:$true] %s1840_s24 }
  0x72   : > { %v761_v31 = vld [vmem:[%s2724_s13 + $0x70] sm:$0xff]  ;;  %v760_v32 = vld [vmem:[%s2724_s13 + $0x68] sm:$0xff]  ;;  %v759_v33 = vld [vmem:[%s2724_s13 + $0x60] sm:$0xff] }
  0x73   : > { %v764_v34 = vld [vmem:[%s2724_s13 + $0x88] sm:$0xff]  ;;  %v763_v35 = vld [vmem:[%s2724_s13 + $0x80] sm:$0xff]  ;;  %v762_v36 = vld [vmem:[%s2724_s13 + $0x78] sm:$0xff] }
  0x74   : > { %v767_v37 = vld [vmem:[%s2724_s13 + $0xa0] sm:$0xff]  ;;  %v766_v38 = vld [vmem:[%s2724_s13 + $0x98] sm:$0xff]  ;;  %v765_v39 = vld [vmem:[%s2724_s13 + $0x90] sm:$0xff] }
  0x75   : > { %v770_v40 = vld [vmem:[%s2724_s13 + $0xb8] sm:$0xff]  ;;  %v769_v41 = vld [vmem:[%s2724_s13 + $0xb0] sm:$0xff]  ;;  %v768_v42 = vld [vmem:[%s2724_s13 + $0xa8] sm:$0xff]  ;;  %s1799_s8 = sand.u32 1, %s3824_s4  }
  0x76   : > { %v547_v43 = vld [vmem:[%s2712_s12 + $0x40] sm:$0xff]  ;;  %v548_v44 = vld [vmem:[%s2712_s12 + $0x48] sm:$0xff]  ;;  %v2763_v45 = vld [vmem:[%s2726_s26 + $0x10] sm:$0xff]  ;;  %s3827_s9 = smov %s3826_s21  ;;  %s1819_s23 = scalar_lea.hbm %s3826_s21, %s2107_s6 }
  0x77   : > { %v2766_v46 = vld [vmem:[%s2726_s26 + $0x18] sm:$0xff]  ;;  %v1075_v47 = vsub.f32 1.0, %v547_v43  ;;  %v627_v48 = vunpack.c.0.s8 %v2763_v45  ;;  %v1076_v50 = vsub.f32 1.0, %v548_v44  ;;  %v773_v51 = vld [vmem:[%s2724_s13 + $0xd0] sm:$0xff]  ;;  %v772_v53 = vld [vmem:[%s2724_s13 + $0xc8] sm:$0xff]  ;;  %v629_v63 = vunpack.c.1.s8 %v2763_v45  ;;  %s1822_s10 = sshll.u32 %s1819_s23, 4  ;;  %s3611_s10 = int_to_ptr.hbm [resolvable:$true] %s1822_s10 }
  0x78   : > { %870 = vperm.xlu2 %2239, %v752_v22   ;;  %3774 = vst [vmem:[#allocation30_spill] sm:$0xff] %v2766_v46  ;;  %v628_v49 = vunpack.c.0.s8 %v2766_v46  ;;  %v771_v54 = vld [vmem:[%s2724_s13 + $0xc0] sm:$0xff]  ;;  %v549_v62 = vld [vmem:[%s2712_s12 + $0x50] sm:$0xff]  ;;  %v630_v0 = vunpack.c.1.s8 %v2766_v46  ;;  %v550_v1 = vld [vmem:[%s2712_s12 + $0x58] sm:$0xff] }
  0x79   : > { %860 = vperm.xlu1 %2238, %v750_v23   ;;  %850 = vperm.xlu0 %2237, %v748_v24   ;;  %v1139_v52 = vmul.f32 0.00016666666, %v1075_v47  ;;  %v2773_v55 = vcvt.s32.f32 %v627_v48  ;;  %v1140_v57 = vmul.f32 0.00016666666, %v1076_v50  ;;  %v1077_v2 = vsub.f32 1.0, %v549_v62  ;;  %v776_v6 = vld [vmem:[%s2724_s13 + $0xe8] sm:$0xff] }
  0x7a   : > { %v2775_v56 = vcvt.s32.f32 %v628_v49  ;;  %v2790_v5 = vcvt.s32.f32 %v629_v63  ;;  %v2794_v7 = vcvt.s32.f32 %v630_v0  ;;  %v1078_v8 = vsub.f32 1.0, %v550_v1  ;;  %v775_v10 = vld [vmem:[%s2724_s13 + $0xe0] sm:$0xff]  ;;  %v774_v11 = vld [vmem:[%s2724_s13 + $0xd8] sm:$0xff]  ;;  %v2804_v17 = vld [vmem:[%s2705_s14 + $0x48] sm:$0xff] }
  0x7b   : > { %v1331_v58 = vmul.f32 %v1139_v52, %v2773_v55  ;;  %v1141_v9 = vmul.f32 0.00016666666, %v1077_v2  ;;  %v2801_v16 = vld [vmem:[%s2705_s14 + $0x40] sm:$0xff]  ;;  %v556_v21 = vld [vmem:[%s2712_s12 + $0x88] sm:$0xff]  ;;  %v778_v24 = vld [vmem:[%s2724_s13 + $0xf8] sm:$0xff] }
  0x7c   : > { %v1332_v59 = vmul.f32 %v1140_v57, %v2775_v56  ;;  %v1142_v12 = vmul.f32 0.00016666666, %v1078_v8  ;;  %v555_v18 = vld [vmem:[%s2712_s12 + $0x80] sm:$0xff]  ;;  %v2816_v23 = vld [vmem:[%s2726_s26 + $0x28] sm:$0xff]  ;;  %v2884_v0 = vld [vmem:[%s2705_s14 + $0xb8] sm:$0xff] }
  0x7d   : > { %v1395_v60 = vadd.f32 %v1331_v58, %v547_v43  ;;  %v1333_v13 = vmul.f32 %v1141_v9, %v2790_v5  ;;  %v2813_v22 = vld [vmem:[%s2726_s26 + $0x20] sm:$0xff]  ;;  %3776 = vst [vmem:[#allocation32_spill] sm:$0xff] %v2816_v23  ;;  %v2855_v43 = vld [vmem:[%s2726_s26 + $0x8] sm:$0xff]  ;;  %v2877_v58 = vld [vmem:[%s2705_s14 + $0xb0] sm:$0xff] }
  0x7e   : > { %v1396_v61 = vadd.f32 %v1332_v59, %v548_v44  ;;  %v1334_v14 = vmul.f32 %v1142_v12, %v2794_v7  ;;  %3775 = vst [vmem:[#allocation31_spill] sm:$0xff] %v2813_v22  ;;  %v2865_v49 = vld [vmem:[%s2712_s12] sm:$0xff]  ;;  %v2868_v50 = vld [vmem:[%s2712_s12 + $0x8] sm:$0xff]  ;;  %v561_v59 = vld [vmem:[%s2712_s12 + $0xb0] sm:$0xff] }
  0x7f   : > { %1523 = vst [vmem:[%s2730_s15 + $0x40] sm:$0xff] %v1395_v60  ;;  %v2785_v3 = vmul.f32 %v1395_v60, %v2773_v55  ;;  %v1397_v15 = vadd.f32 %v1333_v13, %v549_v62  ;;  %v641_v60 = vunpack.c.3.s8 %v2813_v22  ;;  %v1089_v2 = vsub.f32 1.0, %v561_v59 }
  0x80   : > { %885 = vperm.xlu2 %2239, %v755_v25   ;;  %v2788_v4 = vmul.f32 %v1396_v61, %v2775_v56  ;;  %1524 = vst [vmem:[%s2730_s15 + $0x48] sm:$0xff] %v1396_v61  ;;  %v1398_v19 = vadd.f32 %v1334_v14, %v550_v1  ;;  %v2820_v25 = vld [vmem:[%s2705_s14 + $0x50] sm:$0xff]  ;;  %v642_v61 = vunpack.c.3.s8 %v2816_v23  ;;  %v562_v1 = vld [vmem:[%s2712_s12 + $0xb8] sm:$0xff]  ;;  %v1067_v8 = vsub.f32 1.0, %v2865_v49  ;;  %v2899_v14 = vld [vmem:[%s2705_s14 + $0x20] sm:$0xff] }
  0x81   : > { %880 = vperm.xlu1 %2238, %v754_v26   ;;  %875 = vperm.xlu0 %2237, %v753_v27   ;;  %1525 = vst [vmem:[%s2730_s15 + $0x50] sm:$0xff] %v1397_v15  ;;  %v2809_v20 = vmul.f32 %v1397_v15, %v2790_v5  ;;  %v635_v26 = vunpack.c.0.s8 %v2813_v22  ;;  %v636_v27 = vunpack.c.0.s8 %v2816_v23  ;;  %v1068_v9 = vsub.f32 1.0, %v2868_v50  ;;  %v2902_v15 = vld [vmem:[%s2705_s14 + $0x28] sm:$0xff] }
  0x82   : > { %1526 = vst [vmem:[%s2730_s15 + $0x58] sm:$0xff] %v1398_v19  ;;  %v2896_v12 = vcvt.s32.f32 %v642_v61  ;;  %v1090_v13 = vsub.f32 1.0, %v562_v1  ;;  %v1131_v22 = vmul.f32 0.00016666666, %v1067_v8 }
  0x83   : > { %3777 = vst [vmem:[#allocation33_spill] sm:$0xff] %v2884_v0 }
  0x84   : > { %3778 = vst [vmem:[#allocation34_spill] sm:$0xff] %v2899_v14 }
  0x85   : > { %3779 = vst [vmem:[#allocation35_spill] sm:$0xff] %v2902_v15 }
  0x88   : > { %900 = vperm.xlu2 %2239, %v758_v28   ;;  %v1083_v28 = vsub.f32 1.0, %v555_v18 }
  0x89   : > { %895 = vperm.xlu1 %2238, %v757_v29   ;;  %890 = vperm.xlu0 %2237, %v756_v30   ;;  %v2825_v29 = vmul.f32 0.05, %v2801_v16  ;;  %v2828_v30 = vld [vmem:[%s2705_s14 + $0x58] sm:$0xff] }
  0x8a   : > { %v2858_v44 = vmul.f32 0.05, %v2828_v30 }
  0x90   : > { %915 = vperm.xlu2 %2239, %v761_v31   ;;  %v2832_v31 = vmul.f32 %v1398_v19, %v2794_v7 }
  0x91   : > { %910 = vperm.xlu1 %2238, %v760_v32   ;;  %905 = vperm.xlu0 %2237, %v759_v33   ;;  %v2835_v32 = vld [vmem:[%s2705_s14 + $0x80] sm:$0xff]  ;;  %v1084_v33 = vsub.f32 1.0, %v556_v21 }
  0x92   : > { %v2861_v47 = vmul.f32 0.05, %v2835_v32 }
  0x98   : > { %930 = vperm.xlu2 %2239, %v764_v34   ;;  %v777_v34 = vld [vmem:[%s2724_s13 + $0xf0] sm:$0xff] }
  0x99   : > { %925 = vperm.xlu1 %2238, %v763_v35   ;;  %920 = vperm.xlu0 %2237, %v762_v36   ;;  %v2839_v35 = vmul.f32 0.05, %v2804_v17  ;;  %v2842_v36 = vld [vmem:[%s2705_s14 + $0x88] sm:$0xff] }
  0xa0   : > { %945 = vperm.xlu2 %2239, %v767_v37   ;;  %v2844_v37 = vcvt.s32.f32 %v635_v26  ;;  %v624_v26 = vunpack.c.2.s8 %v2855_v43 }
  0xa1   : > { %940 = vperm.xlu1 %2238, %v766_v38   ;;  %935 = vperm.xlu0 %2237, %v765_v39   ;;  %v2846_v38 = vcvt.s32.f32 %v636_v27  ;;  %v1147_v39 = vmul.f32 0.00016666666, %v1083_v28  ;;  %v2914_v27 = vmul.f32 0.05, %v2884_v0  ;;  %v1154_v28 = vmul.f32 0.00016666666, %v1090_v13 }
  0xa3   : > { %v1339_v48 = vmul.f32 %v1147_v39, %v2844_v37  ;;  %v1346_v61 = vmul.f32 %v1154_v28, %v2896_v12 }
  0xa5   : > { %v1403_v57 = vadd.f32 %v1339_v48, %v555_v18  ;;  %v544_v18 = vld [vmem:[%s2712_s12 + $0x28] sm:$0xff] }
  0xa7   : > { %1531 = vst [vmem:[%s2730_s15 + $0x80] sm:$0xff] %v1403_v57 }
  0xa8   : > { %960 = vperm.xlu2 %2239, %v770_v40   ;;  %v2849_v40 = vmul.f32 0.05, %v2820_v25 }
  0xa9   : > { %955 = vperm.xlu1 %2238, %v769_v41   ;;  %950 = vperm.xlu0 %2237, %v768_v42   ;;  %v1148_v41 = vmul.f32 0.00016666666, %v1084_v33  ;;  %v2852_v42 = vld [vmem:[%s2726_s26] sm:$0xff] }
  0xaa   : > { %v623_v62 = vunpack.c.2.s8 %v2852_v42 }
  0xab   : > { %v1340_v52 = vmul.f32 %v1148_v41, %v2846_v38  ;;  %v2923_v41 = vmul.f32 0.05, %v2902_v15 }
  0xac   : > { %v2916_v33 = vcvt.s32.f32 %v623_v62 }
  0xad   : > { %v1404_v63 = vadd.f32 %v1340_v52, %v556_v21  ;;  %v2910_v21 = vmul.f32 0.05, %v2877_v58  ;;  %v1072_v52 = vsub.f32 1.0, %v544_v18 }
  0xaf   : > { %1532 = vst [vmem:[%s2730_s15 + $0x88] sm:$0xff] %v1404_v63  ;;  %v2907_v19 = vmul.f32 %v1404_v63, %v2846_v38  ;;  %v2932_v63 = vcvt.s32.f32 %v624_v26  ;;  %v1136_v23 = vmul.f32 0.00016666666, %v1072_v52  ;;  %v1132_v26 = vmul.f32 0.00016666666, %v1068_v9 }
  0xb0   : > { %975 = vperm.xlu2 %2239, %v773_v51   ;;  %v2871_v51 = vmul.f32 0.05, %v2842_v36 }
  0xb1   : > { %970 = vperm.xlu1 %2238, %v772_v53   ;;  %965 = vperm.xlu0 %2237, %v771_v54   ;;  %v619_v53 = vunpack.c.0.s8 %v2852_v42  ;;  %v620_v54 = vunpack.c.0.s8 %v2855_v43  ;;  %v1328_v9 = vmul.f32 %v1136_v23, %v2932_v63 }
  0xb3   : > { %v2934_v62 = vcvt.s32.f32 %v619_v53 }
  0xb8   : > { %990 = vperm.xlu2 %2239, %v776_v6   ;;  %v543_v6 = vld [vmem:[%s2712_s12 + $0x20] sm:$0xff] }
  0xb9   : > { %985 = vperm.xlu1 %2238, %v775_v10   ;;  %980 = vperm.xlu0 %2237, %v774_v11   ;;  %v2892_v10 = vmul.f32 %v1403_v57, %v2844_v37  ;;  %v2894_v11 = vcvt.s32.f32 %v641_v60  ;;  %v1071_v48 = vsub.f32 1.0, %v543_v6  ;;  %v2926_v57 = vld [vmem:[%s2705_s14] sm:$0xff]  ;;  %v2929_v60 = vld [vmem:[%s2705_s14 + $0x8] sm:$0xff] }
  0xba   : > { %v2939_v0 = vmul.f32 0.05, %v2926_v57  ;;  %v2942_v28 = vmul.f32 0.05, %v2929_v60 }
  0xc1   : > { %1000 = vperm.xlu1 %2238, %v778_v24   ;;  %995 = vperm.xlu0 %2237, %v777_v34   ;;  %v1153_v24 = vmul.f32 0.00016666666, %v1089_v2  ;;  %v2919_v34 = vmul.f32 0.05, %v2899_v14  ;;  %v2936_v2 = vcvt.s32.f32 %v620_v54  ;;  %v1410_v14 = vadd.f32 %v1346_v61, %v562_v1  ;;  %v2952_v1 = vld [vmem:[%s2726_s26 + $0x30] sm:$0xff] }
  0xc2   : > { %3780 = vst [vmem:[#allocation36_spill] sm:$0xff] %v2952_v1 }
  0xc3   : > { %v1345_v39 = vmul.f32 %v1153_v24, %v2894_v11  ;;  %v1135_v24 = vmul.f32 0.00016666666, %v1071_v48  ;;  %1538 = vst [vmem:[%s2730_s15 + $0xb8] sm:$0xff] %v1410_v14 }
  0xc5   : > { %v1409_v13 = vadd.f32 %v1345_v39, %v561_v59  ;;  %v1327_v8 = vmul.f32 %v1135_v24, %v2916_v33  ;;  %v2956_v39 = vmul.f32 %v1410_v14, %v2896_v12  ;;  %v647_v14 = vunpack.c.2.s8 %v2952_v1  ;;  %v546_v1 = vld [vmem:[%s2712_s12 + $0x38] sm:$0xff] }
  0xc7   : > { %1537 = vst [vmem:[%s2730_s15 + $0xb0] sm:$0xff] %v1409_v13  ;;  %v2948_v59 = vmul.f32 %v1409_v13, %v2894_v11  ;;  %v1391_v61 = vadd.f32 %v1327_v8, %v543_v6  ;;  %v1392_v13 = vadd.f32 %v1328_v9, %v544_v18  ;;  %v2999_v9 = vld [vmem:[%s2705_s14 + $0x30] sm:$0xff] }
  0xc8   : > { %3785 = vst [vmem:[#allocation41_spill] sm:$0xff] %v2999_v9 }
  0xc9   : > { %1519 = vst [vmem:[%s2730_s15 + $0x20] sm:$0xff] %v1391_v61  ;;  %v2980_v18 = vmul.f32 %v1391_v61, %v2916_v33 }
  0xca   : > { %v866_v15 = vpop.permute.xlu2 %865  ;;  %1520 = vst [vmem:[%s2730_s15 + $0x28] sm:$0xff] %v1392_v13 }
  0xcb   : > { %v1011_v53 = vsub.f32 %v866_v15, %v2825_v29  ;;  %v1012_v54 = vsub.f32 %v866_v15, %v2839_v35  ;;  %v1323_v29 = vmul.f32 %v1131_v22, %v2934_v62  ;;  %v1324_v35 = vmul.f32 %v1132_v26, %v2936_v2  ;;  %v2962_v15 = vld [vmem:[%s2726_s26 + $0x38] sm:$0xff]  ;;  %v2970_v22 = vld [vmem:[%s2705_s14 + $0xe0] sm:$0xff]  ;;  %v2973_v26 = vld [vmem:[%s2705_s14 + $0xe8] sm:$0xff] }
  0xcc   : > { %3781 = vst [vmem:[#allocation37_spill] sm:$0xff] %v2962_v15  ;;  %v3015_v61 = vmul.f32 0.05, %v2973_v26 }
  0xcd   : > { %v1203_v48 = vmul.f32 %v1011_v53, %v2773_v55  ;;  %v1204_v52 = vmul.f32 %v1012_v54, %v2775_v56  ;;  %v1387_v23 = vadd.f32 %v1323_v29, %v2865_v49  ;;  %v1388_v24 = vadd.f32 %v1324_v35, %v2868_v50  ;;  %3782 = vst [vmem:[#allocation38_spill] sm:$0xff] %v2970_v22  ;;  %v567_v49 = vld [vmem:[%s2712_s12 + $0xe0] sm:$0xff]  ;;  %v568_v50 = vld [vmem:[%s2712_s12 + $0xe8] sm:$0xff]  ;;  %v3002_v29 = vld [vmem:[%s2705_s14 + $0x38] sm:$0xff] }
  0xce   : > { %3783 = vst [vmem:[#allocation39_spill] sm:$0xff] %v2973_v26  ;;  %v648_v55 = vunpack.c.2.s8 %v2962_v15  ;;  %v2984_v53 = vcvt.s32.f32 %v647_v14  ;;  %v2988_v54 = vmul.f32 %v1392_v13, %v2932_v63  ;;  %v1095_v13 = vsub.f32 1.0, %v567_v49  ;;  %v545_v15 = vld [vmem:[%s2712_s12 + $0x30] sm:$0xff] }
  0xcf   : > { %v1267_v56 = vadd.f32 %v1203_v48, %v2801_v16  ;;  %v1268_v6 = vadd.f32 %v1204_v52, %v2804_v17  ;;  %v2991_v8 = vmul.f32 %v1387_v23, %v2934_v62  ;;  %v2994_v16 = vmul.f32 %v1388_v24, %v2936_v2  ;;  %3786 = vst [vmem:[#allocation42_spill] sm:$0xff] %v3002_v29 }
  0xd0   : > { %v2996_v17 = vcvt.s32.f32 %v648_v55  ;;  %v3012_v52 = vmul.f32 0.05, %v2970_v22  ;;  %3789 = vst [vmem:[#allocation45_spill] sm:$0xff] %v3015_v61  ;;  %v1096_v55 = vsub.f32 1.0, %v568_v50 }
  0xd1   : > { %3784 = vst [vmem:[#allocation40_spill] sm:$0xff] %v2994_v16  ;;  %v3006_v35 = vmul.f32 %v2785_v3, %v1267_v56  ;;  %v3009_v48 = vmul.f32 %v2788_v4, %v1268_v6  ;;  %v625_v16 = vunpack.c.3.s8 %v2852_v42  ;;  %v626_v3 = vunpack.c.3.s8 %v2855_v43 }
  0xd2   : > { %1459 = vst [vmem:[%s2728_s11 + $0x40] sm:$0xff] %v1267_v56  ;;  %v871_v14 = vpop.permute.xlu2 %870  ;;  %v1160_v26 = vmul.f32 0.00016666666, %v1096_v55  ;;  %v622_v55 = vunpack.c.1.s8 %v2855_v43 }
  0xd3   : > { %3787 = vst [vmem:[#allocation43_spill] sm:$0xff] %v3006_v35  ;;  %v1013_v4 = vsub.f32 %v871_v14, %v2849_v40  ;;  %v1014_v56 = vsub.f32 %v871_v14, %v2858_v44  ;;  %v3029_v35 = vmul.f32 0.05, %v3002_v29  ;;  %v3032_v22 = vcvt.s32.f32 %v625_v16 }
  0xd4   : > { %3788 = vst [vmem:[#allocation44_spill] sm:$0xff] %v3009_v48  ;;  %v3026_v48 = vmul.f32 0.05, %v2999_v9  ;;  %v3034_v61 = vcvt.s32.f32 %v626_v3  ;;  %v1074_v14 = vsub.f32 1.0, %v546_v1  ;;  %v541_v9 = vld [vmem:[%s2712_s12 + $0x10] sm:$0xff]  ;;  %v3053_v43 = vcvt.s32.f32 %v622_v55 }
  0xd5   : > { %1460 = vst [vmem:[%s2728_s11 + $0x48] sm:$0xff] %v1268_v6  ;;  %v1159_v6 = vmul.f32 0.00016666666, %v1095_v13  ;;  %v1205_v40 = vmul.f32 %v1013_v4, %v2790_v5  ;;  %v1206_v44 = vmul.f32 %v1014_v56, %v2794_v7  ;;  %v621_v13 = vunpack.c.1.s8 %v2852_v42  ;;  %v3045_v4 = vld [vmem:[%s2705_s14 + $0x10] sm:$0xff]  ;;  %v3048_v56 = vld [vmem:[%s2705_s14 + $0x18] sm:$0xff] }
  0xd6   : > { %1515 = vst [vmem:[%s2730_s15] sm:$0xff] %v1387_v23  ;;  %v1073_v23 = vsub.f32 1.0, %v545_v15  ;;  %v1138_v7 = vmul.f32 0.00016666666, %v1074_v14  ;;  %v3079_v14 = vmul.f32 0.05, %v3045_v4 }
  0xd7   : > { %1516 = vst [vmem:[%s2730_s15 + $0x8] sm:$0xff] %v1388_v24  ;;  %v1351_v29 = vmul.f32 %v1159_v6, %v2984_v53  ;;  %v1352_v24 = vmul.f32 %v1160_v26, %v2996_v17  ;;  %v1269_v16 = vadd.f32 %v1205_v40, %v2820_v25  ;;  %v1270_v3 = vadd.f32 %v1206_v44, %v2828_v30 }
  0xd8   : > { %v1137_v5 = vmul.f32 0.00016666666, %v1073_v23  ;;  %v3051_v42 = vcvt.s32.f32 %v621_v13  ;;  %v1330_v44 = vmul.f32 %v1138_v7, %v3034_v61 }
  0xd9   : > { %v1415_v6 = vadd.f32 %v1351_v29, %v567_v49  ;;  %v1416_v26 = vadd.f32 %v1352_v24, %v568_v50  ;;  %1461 = vst [vmem:[%s2728_s11 + $0x50] sm:$0xff] %v1269_v16  ;;  %v3057_v25 = vmul.f32 %v2809_v20, %v1269_v16  ;;  %v3060_v30 = vmul.f32 %v2832_v31, %v1270_v3  ;;  %v542_v49 = vld [vmem:[%s2712_s12 + $0x18] sm:$0xff]  ;;  %v3066_v50 = vld [vmem:[%s2726_s26 + $0x40] sm:$0xff]  ;;  %v3069_v29 = vld [vmem:[%s2726_s26 + $0x48] sm:$0xff] }
  0xda   : > { %v1329_v40 = vmul.f32 %v1137_v5, %v3032_v22  ;;  %3792 = vst [vmem:[#allocation48_spill] sm:$0xff] %v3066_v50  ;;  %v886_v23 = vpop.permute.xlu2 %885  ;;  %v3082_v24 = vmul.f32 0.05, %v3048_v56  ;;  %v1069_v5 = vsub.f32 1.0, %v541_v9  ;;  %v1070_v7 = vsub.f32 1.0, %v542_v49 }
  0xdb   : > { %3790 = vst [vmem:[#allocation46_spill] sm:$0xff] %v3057_v25  ;;  %v3073_v20 = vmul.f32 %v1415_v6, %v2984_v53  ;;  %v3076_v31 = vmul.f32 %v1416_v26, %v2996_v17  ;;  %v1019_v13 = vsub.f32 %v886_v23, %v2861_v47  ;;  %v1020_v55 = vsub.f32 %v886_v23, %v2871_v51  ;;  %v3092_v25 = vld [vmem:[%s2705_s14 + $0x118] sm:$0xff] }
  0xdc   : > { %3791 = vst [vmem:[#allocation47_spill] sm:$0xff] %v3060_v30  ;;  %v1393_v16 = vadd.f32 %v1329_v40, %v545_v15  ;;  %v3089_v30 = vld [vmem:[%s2705_s14 + $0x110] sm:$0xff]  ;;  %v1133_v40 = vmul.f32 0.00016666666, %v1069_v5 }
  0xdd   : > { %3793 = vst [vmem:[#allocation49_spill] sm:$0xff] %v3069_v29  ;;  %v1211_v47 = vmul.f32 %v1019_v13, %v2844_v37  ;;  %v1212_v51 = vmul.f32 %v1020_v55, %v2846_v38  ;;  %v3115_v13 = vmul.f32 0.05, %v3089_v30  ;;  %v3118_v55 = vmul.f32 0.05, %v3092_v25 }
  0xde   : > { %1462 = vst [vmem:[%s2728_s11 + $0x58] sm:$0xff] %v1270_v3  ;;  %v1394_v3 = vadd.f32 %v1330_v44, %v546_v1  ;;  %v3100_v15 = vmul.f32 %v1393_v16, %v3032_v22  ;;  %v1134_v44 = vmul.f32 0.00016666666, %v1070_v7 }
  0xdf   : > { %3794 = vst [vmem:[#allocation50_spill] sm:$0xff] %v3073_v20  ;;  %v654_v20 = vunpack.c.1.s8 %v3069_v29  ;;  %v1275_v37 = vadd.f32 %v1211_v47, %v2835_v32  ;;  %v1276_v38 = vadd.f32 %v1212_v51, %v2842_v36  ;;  %v633_v36 = vunpack.c.3.s8 %v2763_v45 }
  0xe0   : > { %3795 = vst [vmem:[#allocation51_spill] sm:$0xff] %v3076_v31  ;;  %v653_v31 = vunpack.c.1.s8 %v3066_v50  ;;  %v3103_v1 = vmul.f32 %v1394_v3, %v3034_v61 }
  0xe1   : > { %1543 = vst [vmem:[%s2730_s15 + $0xe0] sm:$0xff] %v1415_v6  ;;  %v573_v6 = vld [vmem:[%s2712_s12 + $0x110] sm:$0xff]  ;;  %v3110_v29 = vcvt.s32.f32 %v654_v20  ;;  %v3124_v20 = vmul.f32 %v2892_v10, %v1275_v37  ;;  %v3127_v32 = vmul.f32 %v2907_v19, %v1276_v38  ;;  %v3134_v19 = vcvt.s32.f32 %v633_v36 }
  0xe2   : > { %1544 = vst [vmem:[%s2730_s15 + $0xe8] sm:$0xff] %v1416_v26  ;;  %v574_v26 = vld [vmem:[%s2712_s12 + $0x118] sm:$0xff]  ;;  %v3108_v23 = vcvt.s32.f32 %v653_v31  ;;  %v1101_v5 = vsub.f32 1.0, %v573_v6  ;;  %v634_v31 = vunpack.c.3.s8 %v2766_v46  ;;  %v901_v47 = vpop.permute.xlu2 %900 }
  0xe3   : > { %3796 = vst [vmem:[#allocation52_spill] sm:$0xff] %v3092_v25  ;;  %v1102_v7 = vsub.f32 1.0, %v574_v26  ;;  %v1025_v25 = vsub.f32 %v901_v47, %v2910_v21  ;;  %v1026_v10 = vsub.f32 %v901_v47, %v2914_v27 }
  0xe4   : > { %1521 = vst [vmem:[%s2730_s15 + $0x30] sm:$0xff] %v1393_v16  ;;  %v1325_v16 = vmul.f32 %v1133_v40, %v3051_v42 }
  0xe5   : > { %1522 = vst [vmem:[%s2730_s15 + $0x38] sm:$0xff] %v1394_v3  ;;  %v1326_v3 = vmul.f32 %v1134_v44, %v3053_v43  ;;  %v1165_v44 = vmul.f32 0.00016666666, %v1101_v5  ;;  %v1166_v50 = vmul.f32 0.00016666666, %v1102_v7  ;;  %v1218_v21 = vmul.f32 %v1026_v10, %v2896_v12  ;;  %v3799_v12 = vld [vmem:[#allocation33_spill] sm:$0xff] }
  0xe6   : > { %1467 = vst [vmem:[%s2728_s11 + $0x80] sm:$0xff] %v1275_v37  ;;  %v1389_v51 = vadd.f32 %v1325_v16, %v541_v9  ;;  %v856_v37 = vpop.permute.xlu1 %855  ;;  %v1217_v16 = vmul.f32 %v1025_v25, %v2894_v11 }
  0xe7   : > { %3797 = vst [vmem:[#allocation53_spill] sm:$0xff] %v3124_v20  ;;  %v1390_v40 = vadd.f32 %v1326_v3, %v542_v49  ;;  %v846_v20 = vpop.permute.xlu0 %845  ;;  %v1007_v46 = vsub.f32 %v856_v37, %v2919_v34  ;;  %v1282_v25 = vadd.f32 %v1218_v21, %v3799_v12  ;;  %v1357_v5 = vmul.f32 %v1165_v44, %v3108_v23  ;;  %v3181_v44 = vld [vmem:[%s2705_s14 + $0x70] sm:$0xff]  ;;  %v554_v21 = vld [vmem:[%s2712_s12 + $0x78] sm:$0xff] }
  0xe8   : > { %3798 = vst [vmem:[#allocation54_spill] sm:$0xff] %v3127_v32  ;;  %v3136_v32 = vcvt.s32.f32 %v634_v31  ;;  %v1003_v9 = vsub.f32 %v846_v20, %v2939_v0  ;;  %v1004_v49 = vsub.f32 %v846_v20, %v2942_v28  ;;  %v3147_v27 = vmul.f32 %v1389_v51, %v3051_v42  ;;  %v3800_v20 = vld [vmem:[#allocation34_spill] sm:$0xff]  ;;  %v3801_v31 = vld [vmem:[#allocation35_spill] sm:$0xff] }
  0xe9   : > { %1468 = vst [vmem:[%s2728_s11 + $0x88] sm:$0xff] %v1276_v38  ;;  %v1008_v38 = vsub.f32 %v856_v37, %v2923_v41  ;;  %v3150_v3 = vmul.f32 %v1390_v40, %v3053_v43  ;;  %v1199_v34 = vmul.f32 %v1007_v46, %v2916_v33  ;;  %v1281_v11 = vadd.f32 %v1217_v16, %v2877_v58  ;;  %v553_v16 = vld [vmem:[%s2712_s12 + $0x70] sm:$0xff] }
  0xea   : > { %1517 = vst [vmem:[%s2730_s15 + $0x10] sm:$0xff] %v1389_v51  ;;  %v1195_v0 = vmul.f32 %v1003_v9, %v2934_v62  ;;  %v1196_v28 = vmul.f32 %v1004_v49, %v2936_v2  ;;  %v1358_v7 = vmul.f32 %v1166_v50, %v3110_v29  ;;  %v3169_v62 = vmul.f32 %v2956_v39, %v1282_v25  ;;  %v3184_v39 = vld [vmem:[%s2705_s14 + $0x78] sm:$0xff]  ;;  %v3805_v12 = vld [vmem:[#allocation39_spill] sm:$0xff] }
  0xeb   : > { %1518 = vst [vmem:[%s2730_s15 + $0x18] sm:$0xff] %v1390_v40  ;;  %v1200_v41 = vmul.f32 %v1008_v38, %v2932_v63  ;;  %v1263_v36 = vadd.f32 %v1199_v34, %v3800_v20  ;;  %v3166_v58 = vmul.f32 %v2948_v59, %v1281_v11  ;;  %v1421_v2 = vadd.f32 %v1357_v5, %v573_v6  ;;  %v916_v59 = vpop.permute.xlu2 %915 }
  0xec   : > { %v1259_v33 = vadd.f32 %v1195_v0, %v2926_v57  ;;  %v1260_v63 = vadd.f32 %v1196_v28, %v2929_v60  ;;  %1473 = vst [vmem:[%s2728_s11 + $0xb0] sm:$0xff] %v1281_v11  ;;  %v1422_v50 = vadd.f32 %v1358_v7, %v574_v26  ;;  %v3802_v60 = vld [vmem:[#allocation40_spill] sm:$0xff]  ;;  %v1031_v6 = vsub.f32 %v916_v59, %v3012_v52  ;;  %v3804_v11 = vld [vmem:[#allocation38_spill] sm:$0xff]  ;;  %v3806_v7 = vld [vmem:[#allocation41_spill] sm:$0xff] }
  0xed   : > { %v1264_v46 = vadd.f32 %v1200_v41, %v3801_v31  ;;  %1474 = vst [vmem:[%s2728_s11 + $0xb8] sm:$0xff] %v1282_v25  ;;  %v3173_v47 = vmul.f32 %v2980_v18, %v1263_v36  ;;  %v3803_v18 = vld [vmem:[#allocation45_spill] sm:$0xff]  ;;  %v793_v0 = vmul.f32 0.05, %v3181_v44  ;;  %v794_v28 = vmul.f32 0.05, %v3184_v39 }
  0xee   : > { %v1644_v57 = vmul.f32 %v2991_v8, %v1259_v33  ;;  %v1645_v40 = vmul.f32 %v3802_v60, %v1260_v63  ;;  %1455 = vst [vmem:[%s2728_s11 + $0x20] sm:$0xff] %v1263_v36  ;;  %v1032_v26 = vsub.f32 %v916_v59, %v3803_v18  ;;  %v861_v10 = vpop.permute.xlu1 %860  ;;  %v3190_v8 = vmul.f32 %v1421_v2, %v3108_v23  ;;  %v3807_v36 = vld [vmem:[#allocation42_spill] sm:$0xff] }
  0xef   : > { %v3176_v51 = vmul.f32 %v2988_v54, %v1264_v46  ;;  %v851_v54 = vpop.permute.xlu0 %850  ;;  %v3193_v37 = vmul.f32 %v1422_v50, %v3110_v29  ;;  %1456 = vst [vmem:[%s2728_s11 + $0x28] sm:$0xff] %v1264_v46  ;;  %v1009_v38 = vsub.f32 %v861_v10, %v3026_v48  ;;  %v1010_v9 = vsub.f32 %v861_v10, %v3029_v35  ;;  %v3809_v46 = vld [vmem:[#allocation51_spill] sm:$0xff] }
  0xf0   : > { %v1005_v49 = vsub.f32 %v851_v54, %v3079_v14  ;;  %v1006_v52 = vsub.f32 %v851_v54, %v3082_v24  ;;  %1451 = vst [vmem:[%s2728_s11] sm:$0xff] %v1259_v33  ;;  %v1223_v34 = vmul.f32 %v1031_v6, %v2984_v53  ;;  %v1224_v41 = vmul.f32 %v1032_v26, %v2996_v17 }
  0xf1   : > { %1452 = vst [vmem:[%s2728_s11 + $0x8] sm:$0xff] %v1260_v63  ;;  %v1201_v35 = vmul.f32 %v1009_v38, %v3032_v22  ;;  %v1202_v48 = vmul.f32 %v1010_v9, %v3034_v61  ;;  %v1081_v25 = vsub.f32 1.0, %v553_v16  ;;  %v1082_v5 = vsub.f32 1.0, %v554_v21 }
  0xf2   : > { %v1197_v14 = vmul.f32 %v1005_v49, %v3051_v42  ;;  %v1198_v24 = vmul.f32 %v1006_v52, %v3053_v43  ;;  %v1287_v53 = vadd.f32 %v1223_v34, %v3804_v11  ;;  %v1288_v17 = vadd.f32 %v1224_v41, %v3805_v12  ;;  %1549 = vst [vmem:[%s2730_s15 + $0x110] sm:$0xff] %v1421_v2  ;;  %v3808_v42 = vld [vmem:[#allocation50_spill] sm:$0xff] }
  0xf3   : > { %v1265_v20 = vadd.f32 %v1201_v35, %v3806_v7  ;;  %v1266_v31 = vadd.f32 %v1202_v48, %v3807_v36  ;;  %1550 = vst [vmem:[%s2730_s15 + $0x118] sm:$0xff] %v1422_v50  ;;  %v1145_v63 = vmul.f32 0.00016666666, %v1081_v25  ;;  %v1146_v2 = vmul.f32 0.00016666666, %v1082_v5  ;;  %v931_v50 = vpop.permute.xlu2 %930  ;;  %v552_v48 = vld [vmem:[%s2712_s12 + $0x68] sm:$0xff] }
  0xf4   : > { %v1261_v22 = vadd.f32 %v1197_v14, %v3045_v4  ;;  %v1262_v61 = vadd.f32 %v1198_v24, %v3048_v56  ;;  %1479 = vst [vmem:[%s2728_s11 + $0xe0] sm:$0xff] %v1287_v53  ;;  %v3222_v43 = vmul.f32 %v3808_v42, %v1287_v53  ;;  %v3225_v33 = vmul.f32 %v3809_v46, %v1288_v17  ;;  %v3811_v11 = vld [vmem:[#allocation30_spill] sm:$0xff]  ;;  %v3268_v53 = vld [vmem:[%s2726_s26 + $0x50] sm:$0xff]  ;;  %v3276_v25 = vld [vmem:[%s2726_s26 + $0x58] sm:$0xff] }
  0xf5   : > { %1480 = vst [vmem:[%s2728_s11 + $0xe8] sm:$0xff] %v1288_v17  ;;  %v1650_v60 = vmul.f32 %v3100_v15, %v1265_v20  ;;  %v1651_v59 = vmul.f32 %v3103_v1, %v1266_v31  ;;  %v1037_v6 = vsub.f32 %v931_v50, %v3115_v13  ;;  %v1038_v18 = vsub.f32 %v931_v50, %v3118_v55 }
  0xf6   : > { %v1646_v4 = vmul.f32 %v3147_v27, %v1261_v22  ;;  %v1647_v56 = vmul.f32 %v3150_v3, %v1262_v61  ;;  %1457 = vst [vmem:[%s2728_s11 + $0x30] sm:$0xff] %v1265_v20  ;;  %v881_v26 = vpop.permute.xlu1 %880  ;;  %v1337_v10 = vmul.f32 %v1145_v63, %v3134_v19  ;;  %v1338_v54 = vmul.f32 %v1146_v2, %v3136_v32  ;;  %v515_v2 = vld [vmem:[%s2705_s14 + $0x140] sm:$0xff] }
  0xf7   : > { %1458 = vst [vmem:[%s2728_s11 + $0x38] sm:$0xff] %v1266_v31  ;;  %v1017_v38 = vsub.f32 %v881_v26, %v793_v0  ;;  %v1018_v27 = vsub.f32 %v881_v26, %v794_v28  ;;  %v1229_v3 = vmul.f32 %v1037_v6, %v3108_v23  ;;  %v1230_v13 = vmul.f32 %v1038_v18, %v3110_v29  ;;  %v3810_v23 = vld [vmem:[#allocation52_spill] sm:$0xff]  ;;  %v876_v14 = vpop.permute.xlu0 %875  ;;  %v3812_v31 = vld [vmem:[#allocation43_spill] sm:$0xff]  ;;  %v3814_v6 = vld [vmem:[#allocation46_spill] sm:$0xff] }
  0xf8   : > { %v1708_v15 = vadd.f32 %v1646_v4, %v1644_v57  ;;  %v1745_v1 = vadd.f32 %v1647_v56, %v1645_v40  ;;  %1453 = vst [vmem:[%s2728_s11 + $0x10] sm:$0xff] %v1261_v22  ;;  %v1401_v9 = vadd.f32 %v1337_v10, %v553_v16  ;;  %v1402_v55 = vadd.f32 %v1338_v54, %v554_v21  ;;  %v488_v21 = vld [vmem:[%s2705_s14 + $0x68] sm:$0xff]  ;;  %v579_v54 = vld [vmem:[%s2712_s12 + $0x140] sm:$0xff] }
  0xf9   : > { %1454 = vst [vmem:[%s2728_s11 + $0x18] sm:$0xff] %v1262_v61  ;;  %v1209_v40 = vmul.f32 %v1017_v38, %v3134_v19  ;;  %v1210_v52 = vmul.f32 %v1018_v27, %v3136_v32  ;;  %v1293_v34 = vadd.f32 %v1229_v3, %v3089_v30  ;;  %v1294_v41 = vadd.f32 %v1230_v13, %v3810_v23  ;;  %v551_v30 = vld [vmem:[%s2712_s12 + $0x60] sm:$0xff]  ;;  %v3813_v61 = vld [vmem:[#allocation44_spill] sm:$0xff]  ;;  %v3815_v26 = vld [vmem:[#allocation47_spill] sm:$0xff] }
  0xfa   : > { %v1709_v49 = vadd.f32 %v1708_v15, %v3173_v47  ;;  %v1746_v57 = vadd.f32 %v1745_v1, %v3176_v51  ;;  %1529 = vst [vmem:[%s2730_s15 + $0x70] sm:$0xff] %v1401_v9  ;;  %v1594_v29 = vmul.f32 %v1401_v9, %v3134_v19  ;;  %v1595_v16 = vmul.f32 %v1402_v55, %v3136_v32  ;;  %v487_v47 = vld [vmem:[%s2705_s14 + $0x60] sm:$0xff]  ;;  %v580_v15 = vld [vmem:[%s2712_s12 + $0x148] sm:$0xff] }
  0xfb   : > { %v1273_v28 = vadd.f32 %v1209_v40, %v3181_v44  ;;  %v1274_v35 = vadd.f32 %v1210_v52, %v3184_v39  ;;  %1530 = vst [vmem:[%s2730_s15 + $0x78] sm:$0xff] %v1402_v55  ;;  %v3260_v19 = vmul.f32 %v3190_v8, %v1293_v34  ;;  %v3263_v32 = vmul.f32 %v3193_v37, %v1294_v41  ;;  %v946_v27 = vpop.permute.xlu2 %945 }
  0xfc   : > { %v1710_v51 = vadd.f32 %v1709_v49, %v1650_v60  ;;  %v1747_v0 = vadd.f32 %v1746_v57, %v1651_v59  ;;  %1485 = vst [vmem:[%s2728_s11 + $0x110] sm:$0xff] %v1293_v34  ;;  %v631_v24 = vunpack.c.2.s8 %v2763_v45  ;;  %v632_v44 = vunpack.c.2.s8 %v3811_v11  ;;  %v516_v60 = vld [vmem:[%s2705_s14 + $0x148] sm:$0xff] }
  0xfd   : > { %1486 = vst [vmem:[%s2728_s11 + $0x118] sm:$0xff] %v1294_v41  ;;  %v3271_v39 = vmul.f32 %v1594_v29, %v1273_v28  ;;  %v3273_v12 = vmul.f32 %v1595_v16, %v1274_v35  ;;  %v791_v17 = vmul.f32 0.05, %v487_v47  ;;  %v792_v8 = vmul.f32 0.05, %v488_v21  ;;  %v495_v16 = vld [vmem:[%s2705_s14 + $0xa0] sm:$0xff] }
  0xfe   : > { %1465 = vst [vmem:[%s2728_s11 + $0x70] sm:$0xff] %v1273_v28  ;;  %v695_v37 = vcvt.s32.f32 %v631_v24  ;;  %v696_v5 = vcvt.s32.f32 %v632_v44  ;;  %v1079_v7 = vsub.f32 1.0, %v551_v30  ;;  %v1080_v45 = vsub.f32 1.0, %v552_v48  ;;  %v3817_v28 = vld [vmem:[#allocation32_spill] sm:$0xff]  ;;  %v496_v24 = vld [vmem:[%s2705_s14 + $0xa8] sm:$0xff] }
  0xff   : > { %1466 = vst [vmem:[%s2728_s11 + $0x78] sm:$0xff] %v1274_v35  ;;  %v1015_v20 = vsub.f32 %v876_v14, %v791_v17  ;;  %v1016_v36 = vsub.f32 %v876_v14, %v792_v8  ;;  %v1711_v22 = vadd.f32 %v1710_v51, %v3812_v31  ;;  %v1748_v42 = vadd.f32 %v1747_v0, %v3813_v61  ;;  %v3816_v51 = vld [vmem:[#allocation31_spill] sm:$0xff]  ;;  %v559_v31 = vld [vmem:[%s2712_s12 + $0xa0] sm:$0xff] }
 0x100   : > { %v1143_v46 = vmul.f32 0.00016666666, %v1079_v7  ;;  %v1144_v63 = vmul.f32 0.00016666666, %v1080_v45  ;;  %v659_v59 = vunpack.c.0.s8 %v3268_v53  ;;  %v660_v4 = vunpack.c.0.s8 %v3276_v25 }
 0x101   : > { %v1207_v56 = vmul.f32 %v1015_v20, %v695_v37  ;;  %v1208_v50 = vmul.f32 %v1016_v36, %v696_v5  ;;  %v1712_v18 = vadd.f32 %v1711_v22, %v3814_v6  ;;  %v1749_v10 = vadd.f32 %v1748_v42, %v3815_v26  ;;  %v896_v36 = vpop.permute.xlu1 %895 }
 0x102   : > { %v1335_v1 = vmul.f32 %v1143_v46, %v695_v37  ;;  %v1336_v38 = vmul.f32 %v1144_v63, %v696_v5  ;;  %v723_v3 = vcvt.s32.f32 %v659_v59  ;;  %v724_v13 = vcvt.s32.f32 %v660_v4 }
 0x103   : > { %v1271_v9 = vadd.f32 %v1207_v56, %v487_v47  ;;  %v1272_v55 = vadd.f32 %v1208_v50, %v488_v21  ;;  %v819_v49 = vmul.f32 0.05, %v515_v2  ;;  %v820_v57 = vmul.f32 0.05, %v516_v60 }
 0x104   : > { %v1399_v40 = vadd.f32 %v1335_v1, %v551_v30  ;;  %v1400_v52 = vadd.f32 %v1336_v38, %v552_v48  ;;  %v1107_v34 = vsub.f32 1.0, %v579_v54  ;;  %v1108_v23 = vsub.f32 1.0, %v580_v15 }
 0x105   : > { %1463 = vst [vmem:[%s2728_s11 + $0x60] sm:$0xff] %v1271_v9  ;;  %v1043_v41 = vsub.f32 %v946_v27, %v819_v49  ;;  %v1044_v29 = vsub.f32 %v946_v27, %v820_v57  ;;  %v639_v0 = vunpack.c.2.s8 %v3816_v51  ;;  %v640_v35 = vunpack.c.2.s8 %v3817_v28  ;;  %v558_v57 = vld [vmem:[%s2712_s12 + $0x98] sm:$0xff] }
 0x106   : > { %1464 = vst [vmem:[%s2728_s11 + $0x68] sm:$0xff] %v1272_v55  ;;  %v1592_v47 = vmul.f32 %v1399_v40, %v695_v37  ;;  %v1593_v21 = vmul.f32 %v1400_v52, %v696_v5  ;;  %v1171_v14 = vmul.f32 0.00016666666, %v1107_v34  ;;  %v1172_v30 = vmul.f32 0.00016666666, %v1108_v23  ;;  %v560_v37 = vld [vmem:[%s2712_s12 + $0xa8] sm:$0xff]  ;;  %v891_v23 = vpop.permute.xlu0 %890 }
 0x107   : > { %1527 = vst [vmem:[%s2730_s15 + $0x60] sm:$0xff] %v1399_v40  ;;  %v1235_v48 = vmul.f32 %v1043_v41, %v723_v3  ;;  %v1236_v11 = vmul.f32 %v1044_v29, %v724_v13  ;;  %v703_v44 = vcvt.s32.f32 %v639_v0  ;;  %v704_v17 = vcvt.s32.f32 %v640_v35 }
 0x108   : > { %1528 = vst [vmem:[%s2730_s15 + $0x68] sm:$0xff] %v1400_v52  ;;  %v1656_v8 = vmul.f32 %v1592_v47, %v1271_v9  ;;  %v1657_v7 = vmul.f32 %v1593_v21, %v1272_v55  ;;  %v1363_v45 = vmul.f32 %v1171_v14, %v723_v3  ;;  %v1364_v20 = vmul.f32 %v1172_v30, %v724_v13  ;;  %v494_v9 = vld [vmem:[%s2705_s14 + $0x98] sm:$0xff] }
 0x109   : > { %v1299_v5 = vadd.f32 %v1235_v48, %v515_v2  ;;  %v1300_v22 = vadd.f32 %v1236_v11, %v516_v60  ;;  %v799_v61 = vmul.f32 0.05, %v495_v16  ;;  %v800_v42 = vmul.f32 0.05, %v496_v24  ;;  %v3818_v30 = vld [vmem:[#allocation53_spill] sm:$0xff]  ;;  %v3819_v48 = vld [vmem:[#allocation54_spill] sm:$0xff] }
 0x10a   : > { %v1713_v46 = vadd.f32 %v1712_v18, %v1656_v8  ;;  %v1750_v63 = vadd.f32 %v1749_v10, %v1657_v7  ;;  %v1427_v59 = vadd.f32 %v1363_v45, %v579_v54  ;;  %v1428_v4 = vadd.f32 %v1364_v20, %v580_v15  ;;  %v493_v18 = vld [vmem:[%s2705_s14 + $0x90] sm:$0xff] }
 0x10b   : > { %1491 = vst [vmem:[%s2728_s11 + $0x140] sm:$0xff] %v1299_v5  ;;  %v1023_v56 = vsub.f32 %v896_v36, %v799_v61  ;;  %v1024_v50 = vsub.f32 %v896_v36, %v800_v42  ;;  %v1087_v6 = vsub.f32 1.0, %v559_v31  ;;  %v1088_v26 = vsub.f32 1.0, %v560_v37 }
 0x10c   : > { %v1714_v1 = vadd.f32 %v1713_v46, %v3271_v39  ;;  %v1751_v2 = vadd.f32 %v1750_v63, %v3273_v12  ;;  %1492 = vst [vmem:[%s2728_s11 + $0x148] sm:$0xff] %v1300_v22  ;;  %v1620_v60 = vmul.f32 %v1427_v59, %v723_v3  ;;  %v1621_v38 = vmul.f32 %v1428_v4, %v724_v13  ;;  %v557_v39 = vld [vmem:[%s2712_s12 + $0x90] sm:$0xff] }
 0x10d   : > { %1555 = vst [vmem:[%s2730_s15 + $0x140] sm:$0xff] %v1427_v59  ;;  %v1151_v10 = vmul.f32 0.00016666666, %v1087_v6  ;;  %v1152_v54 = vmul.f32 0.00016666666, %v1088_v26  ;;  %v1215_v15 = vmul.f32 %v1023_v56, %v703_v44  ;;  %v1216_v27 = vmul.f32 %v1024_v50, %v704_v17  ;;  %v961_v50 = vpop.permute.xlu2 %960 }
 0x10e   : > { %1556 = vst [vmem:[%s2730_s15 + $0x148] sm:$0xff] %v1428_v4  ;;  %v3308_v55 = vmul.f32 %v1620_v60, %v1299_v5  ;;  %v3310_v49 = vmul.f32 %v1621_v38, %v1300_v22  ;;  %v637_v12 = vunpack.c.1.s8 %v3816_v51  ;;  %v638_v3 = vunpack.c.1.s8 %v3817_v28  ;;  %v522_v5 = vld [vmem:[%s2705_s14 + $0x178] sm:$0xff]  ;;  %v585_v4 = vld [vmem:[%s2712_s12 + $0x170] sm:$0xff] }
 0x10f   : > { %v1279_v13 = vadd.f32 %v1215_v15, %v495_v16  ;;  %v1280_v40 = vadd.f32 %v1216_v27, %v496_v24  ;;  %v1343_v52 = vmul.f32 %v1151_v10, %v703_v44  ;;  %v1344_v34 = vmul.f32 %v1152_v54, %v704_v17  ;;  %v3820_v15 = vld [vmem:[#allocation36_spill] sm:$0xff] }
 0x110   : > { %v701_v41 = vcvt.s32.f32 %v637_v12  ;;  %v702_v29 = vcvt.s32.f32 %v638_v3  ;;  %v797_v0 = vmul.f32 0.05, %v493_v18  ;;  %v798_v35 = vmul.f32 0.05, %v494_v9  ;;  %v3821_v12 = vld [vmem:[#allocation37_spill] sm:$0xff] }
 0x111   : > { %v1407_v47 = vadd.f32 %v1343_v52, %v559_v31  ;;  %v1408_v21 = vadd.f32 %v1344_v34, %v560_v37  ;;  %1471 = vst [vmem:[%s2728_s11 + $0xa0] sm:$0xff] %v1279_v13  ;;  %v1085_v14 = vsub.f32 1.0, %v557_v39  ;;  %v1086_v51 = vsub.f32 1.0, %v558_v57  ;;  %v521_v37 = vld [vmem:[%s2705_s14 + $0x170] sm:$0xff] }
 0x112   : > { %1472 = vst [vmem:[%s2728_s11 + $0xa8] sm:$0xff] %v1280_v40  ;;  %v1021_v28 = vsub.f32 %v891_v23, %v797_v0  ;;  %v1022_v16 = vsub.f32 %v891_v23, %v798_v35  ;;  %v1715_v24 = vadd.f32 %v1714_v1, %v3818_v30  ;;  %v1752_v11 = vadd.f32 %v1751_v2, %v3819_v48  ;;  %v501_v52 = vld [vmem:[%s2705_s14 + $0xd0] sm:$0xff] }
 0x113   : > { %1535 = vst [vmem:[%s2730_s15 + $0xa0] sm:$0xff] %v1407_v47  ;;  %v1600_v8 = vmul.f32 %v1407_v47, %v703_v44  ;;  %v1601_v7 = vmul.f32 %v1408_v21, %v704_v17  ;;  %v1149_v45 = vmul.f32 0.00016666666, %v1085_v14  ;;  %v1150_v20 = vmul.f32 0.00016666666, %v1086_v51  ;;  %v586_v44 = vld [vmem:[%s2712_s12 + $0x178] sm:$0xff] }
 0x114   : > { %1536 = vst [vmem:[%s2730_s15 + $0xa8] sm:$0xff] %v1408_v21  ;;  %v1213_v36 = vmul.f32 %v1021_v28, %v701_v41  ;;  %v1214_v31 = vmul.f32 %v1022_v16, %v702_v29  ;;  %v665_v22 = vunpack.c.3.s8 %v3268_v53  ;;  %v666_v61 = vunpack.c.3.s8 %v3276_v25  ;;  %v565_v28 = vld [vmem:[%s2712_s12 + $0xd0] sm:$0xff]  ;;  %v566_v16 = vld [vmem:[%s2712_s12 + $0xd8] sm:$0xff] }
 0x115   : > { %v1664_v42 = vmul.f32 %v1600_v8, %v1279_v13  ;;  %v1665_v46 = vmul.f32 %v1601_v7, %v1280_v40  ;;  %v1341_v63 = vmul.f32 %v1149_v45, %v701_v41  ;;  %v1342_v59 = vmul.f32 %v1150_v20, %v702_v29 }
 0x116   : > { %v1277_v17 = vadd.f32 %v1213_v36, %v493_v18  ;;  %v1278_v56 = vadd.f32 %v1214_v31, %v494_v9  ;;  %v729_v6 = vcvt.s32.f32 %v665_v22  ;;  %v730_v26 = vcvt.s32.f32 %v666_v61 }
 0x117   : > { %v1405_v1 = vadd.f32 %v1341_v63, %v557_v39  ;;  %v1406_v2 = vadd.f32 %v1342_v59, %v558_v57  ;;  %v825_v60 = vmul.f32 0.05, %v521_v37  ;;  %v826_v38 = vmul.f32 0.05, %v522_v5  ;;  %v502_v39 = vld [vmem:[%s2705_s14 + $0xd8] sm:$0xff] }
 0x118   : > { %1469 = vst [vmem:[%s2728_s11 + $0x90] sm:$0xff] %v1277_v17  ;;  %v1113_v10 = vsub.f32 1.0, %v585_v4  ;;  %v1114_v54 = vsub.f32 1.0, %v586_v44  ;;  %v645_v27 = vunpack.c.1.s8 %v3820_v15  ;;  %v646_v3 = vunpack.c.1.s8 %v3821_v12 }
 0x119   : > { %1470 = vst [vmem:[%s2728_s11 + $0x98] sm:$0xff] %v1278_v56  ;;  %v1598_v18 = vmul.f32 %v1405_v1, %v701_v41  ;;  %v1599_v9 = vmul.f32 %v1406_v2, %v702_v29  ;;  %v1049_v13 = vsub.f32 %v961_v50, %v825_v60  ;;  %v1050_v40 = vsub.f32 %v961_v50, %v826_v38  ;;  %v911_v41 = vpop.permute.xlu1 %910 }
 0x11a   : > { %1533 = vst [vmem:[%s2730_s15 + $0x90] sm:$0xff] %v1405_v1  ;;  %v1177_v57 = vmul.f32 0.00016666666, %v1113_v10  ;;  %v1178_v34 = vmul.f32 0.00016666666, %v1114_v54  ;;  %v3335_v23 = vcvt.s32.f32 %v645_v27  ;;  %v3337_v0 = vcvt.s32.f32 %v646_v3  ;;  %v564_v10 = vld [vmem:[%s2712_s12 + $0xc8] sm:$0xff]  ;;  %v906_v3 = vpop.permute.xlu0 %905 }
 0x11b   : > { %1534 = vst [vmem:[%s2730_s15 + $0x98] sm:$0xff] %v1406_v2  ;;  %v1662_v35 = vmul.f32 %v1598_v18, %v1277_v17  ;;  %v1663_v47 = vmul.f32 %v1599_v9, %v1278_v56  ;;  %v1241_v21 = vmul.f32 %v1049_v13, %v729_v6  ;;  %v1242_v14 = vmul.f32 %v1050_v40, %v730_v26  ;;  %v3361_v13 = vld [vmem:[%s2726_s26 + $0x60] sm:$0xff] }
 0x11c   : > { %v1369_v29 = vmul.f32 %v1177_v57, %v729_v6  ;;  %v1370_v51 = vmul.f32 %v1178_v34, %v730_v26  ;;  %v805_v30 = vmul.f32 0.05, %v501_v52  ;;  %v806_v48 = vmul.f32 0.05, %v502_v39 }
 0x11d   : > { %v1716_v8 = vadd.f32 %v1715_v24, %v1662_v35  ;;  %v1753_v7 = vadd.f32 %v1752_v11, %v1663_v47  ;;  %v1305_v45 = vadd.f32 %v1241_v21, %v521_v37  ;;  %v1306_v20 = vadd.f32 %v1242_v14, %v522_v5  ;;  %v499_v5 = vld [vmem:[%s2705_s14 + $0xc0] sm:$0xff] }
 0x11e   : > { %v1433_v36 = vadd.f32 %v1369_v29, %v585_v4  ;;  %v1434_v31 = vadd.f32 %v1370_v51, %v586_v44  ;;  %v1029_v22 = vsub.f32 %v911_v41, %v805_v30  ;;  %v1030_v61 = vsub.f32 %v911_v41, %v806_v48  ;;  %v563_v4 = vld [vmem:[%s2712_s12 + $0xc0] sm:$0xff] }
 0x11f   : > { %v1717_v63 = vadd.f32 %v1716_v8, %v1664_v42  ;;  %v1754_v59 = vadd.f32 %v1753_v7, %v1665_v46  ;;  %1497 = vst [vmem:[%s2728_s11 + $0x170] sm:$0xff] %v1305_v45  ;;  %v1093_v17 = vsub.f32 1.0, %v565_v28  ;;  %v1094_v56 = vsub.f32 1.0, %v566_v16  ;;  %v500_v42 = vld [vmem:[%s2705_s14 + $0xc8] sm:$0xff] }
 0x120   : > { %1498 = vst [vmem:[%s2728_s11 + $0x178] sm:$0xff] %v1306_v20  ;;  %v1626_v50 = vmul.f32 %v1433_v36, %v729_v6  ;;  %v1627_v24 = vmul.f32 %v1434_v31, %v730_v26  ;;  %v1221_v11 = vmul.f32 %v1029_v22, %v3335_v23  ;;  %v1222_v37 = vmul.f32 %v1030_v61, %v3337_v0  ;;  %v528_v7 = vld [vmem:[%s2705_s14 + $0x1a8] sm:$0xff] }
 0x121   : > { %1561 = vst [vmem:[%s2730_s15 + $0x170] sm:$0xff] %v1433_v36  ;;  %v1157_v44 = vmul.f32 0.00016666666, %v1093_v17  ;;  %v1158_v1 = vmul.f32 0.00016666666, %v1094_v56  ;;  %v643_v46 = vunpack.c.0.s8 %v3820_v15  ;;  %v644_v2 = vunpack.c.0.s8 %v3821_v12  ;;  %v3364_v15 = vld [vmem:[%s2726_s26 + $0x68] sm:$0xff] }
 0x122   : > { %1562 = vst [vmem:[%s2730_s15 + $0x178] sm:$0xff] %v1434_v31  ;;  %v3353_v6 = vmul.f32 %v1626_v50, %v1305_v45  ;;  %v3355_v26 = vmul.f32 %v1627_v24, %v1306_v20  ;;  %v1285_v60 = vadd.f32 %v1221_v11, %v501_v52  ;;  %v1286_v38 = vadd.f32 %v1222_v37, %v502_v39  ;;  %v591_v45 = vld [vmem:[%s2712_s12 + $0x1a0] sm:$0xff]  ;;  %v592_v20 = vld [vmem:[%s2712_s12 + $0x1a8] sm:$0xff] }
 0x123   : > { %v1349_v54 = vmul.f32 %v1157_v44, %v3335_v23  ;;  %v1350_v27 = vmul.f32 %v1158_v1, %v3337_v0  ;;  %v707_v18 = vcvt.s32.f32 %v643_v46  ;;  %v708_v9 = vcvt.s32.f32 %v644_v2  ;;  %v507_v46 = vld [vmem:[%s2705_s14 + $0x100] sm:$0xff]  ;;  %v3822_v2 = vld [vmem:[#allocation48_spill] sm:$0xff] }
 0x124   : > { %1477 = vst [vmem:[%s2728_s11 + $0xd0] sm:$0xff] %v1285_v60  ;;  %v803_v12 = vmul.f32 0.05, %v499_v5  ;;  %v804_v40 = vmul.f32 0.05, %v500_v42  ;;  %v1091_v52 = vsub.f32 1.0, %v563_v4  ;;  %v1718_v39 = vadd.f32 %v1717_v63, %v3166_v58 }
 0x125   : > { %v1413_v57 = vadd.f32 %v1349_v54, %v565_v28  ;;  %v1414_v34 = vadd.f32 %v1350_v27, %v566_v16  ;;  %1478 = vst [vmem:[%s2728_s11 + $0xd8] sm:$0xff] %v1286_v38  ;;  %v1092_v35 = vsub.f32 1.0, %v564_v10  ;;  %v1755_v47 = vadd.f32 %v1754_v59, %v3169_v62  ;;  %v527_v28 = vld [vmem:[%s2705_s14 + $0x1a0] sm:$0xff] }
 0x126   : > { %v1027_v21 = vsub.f32 %v906_v3, %v803_v12  ;;  %v1028_v14 = vsub.f32 %v906_v3, %v804_v40  ;;  %v1155_v41 = vmul.f32 0.00016666666, %v1091_v52  ;;  %v671_v29 = vunpack.c.2.s8 %v3361_v13 }
 0x127   : > { %1541 = vst [vmem:[%s2730_s15 + $0xd0] sm:$0xff] %v1413_v57  ;;  %v1606_v51 = vmul.f32 %v1413_v57, %v3335_v23  ;;  %v1607_v58 = vmul.f32 %v1414_v34, %v3337_v0  ;;  %v1156_v30 = vmul.f32 0.00016666666, %v1092_v35  ;;  %v672_v16 = vunpack.c.2.s8 %v3364_v15  ;;  %v976_v23 = vpop.permute.xlu2 %975 }
 0x128   : > { %1542 = vst [vmem:[%s2730_s15 + $0xd8] sm:$0xff] %v1414_v34  ;;  %v1219_v48 = vmul.f32 %v1027_v21, %v707_v18  ;;  %v1220_v8 = vmul.f32 %v1028_v14, %v708_v9  ;;  %v1347_v62 = vmul.f32 %v1155_v41, %v707_v18  ;;  %v735_v36 = vcvt.s32.f32 %v671_v29  ;;  %v571_v21 = vld [vmem:[%s2712_s12 + $0x100] sm:$0xff]  ;;  %v572_v29 = vld [vmem:[%s2712_s12 + $0x108] sm:$0xff] }
 0x129   : > { %v1670_v31 = vmul.f32 %v1606_v51, %v1285_v60  ;;  %v1671_v22 = vmul.f32 %v1607_v58, %v1286_v38  ;;  %v1348_v61 = vmul.f32 %v1156_v30, %v708_v9  ;;  %v736_v0 = vcvt.s32.f32 %v672_v16  ;;  %v3823_v38 = vld [vmem:[#allocation49_spill] sm:$0xff] }
 0x12a   : > { %v1283_v63 = vadd.f32 %v1219_v48, %v499_v5  ;;  %v1284_v59 = vadd.f32 %v1220_v8, %v500_v42  ;;  %v1411_v17 = vadd.f32 %v1347_v62, %v563_v4  ;;  %v831_v56 = vmul.f32 0.05, %v527_v28 }
 0x12b   : > { %v1412_v50 = vadd.f32 %v1348_v61, %v564_v10  ;;  %v832_v24 = vmul.f32 0.05, %v528_v7  ;;  %v1119_v11 = vsub.f32 1.0, %v591_v45  ;;  %v1120_v37 = vsub.f32 1.0, %v592_v20  ;;  %v508_v10 = vld [vmem:[%s2705_s14 + $0x108] sm:$0xff] }
 0x12c   : > { %1475 = vst [vmem:[%s2728_s11 + $0xc0] sm:$0xff] %v1283_v63  ;;  %v1604_v44 = vmul.f32 %v1411_v17, %v707_v18  ;;  %v1055_v1 = vsub.f32 %v976_v23, %v831_v56  ;;  %v651_v60 = vunpack.c.0.s8 %v3822_v2  ;;  %v652_v54 = vunpack.c.0.s8 %v3823_v38  ;;  %v2240_v56 = vld [vmem:[%s2726_s26 + $0x30] sm:$0xff]  ;;  %v921_v38 = vpop.permute.xlu0 %920 }
 0x12d   : > { %1476 = vst [vmem:[%s2728_s11 + $0xc8] sm:$0xff] %v1284_v59  ;;  %v1605_v5 = vmul.f32 %v1412_v50, %v708_v9  ;;  %v1056_v4 = vsub.f32 %v976_v23, %v832_v24  ;;  %v1183_v42 = vmul.f32 0.00016666666, %v1119_v11  ;;  %v1184_v27 = vmul.f32 0.00016666666, %v1120_v37  ;;  %v926_v9 = vpop.permute.xlu1 %925  ;;  %v570_v11 = vld [vmem:[%s2712_s12 + $0xf8] sm:$0xff] }
 0x12e   : > { %1539 = vst [vmem:[%s2730_s15 + $0xc0] sm:$0xff] %v1411_v17  ;;  %v1668_v3 = vmul.f32 %v1604_v44, %v1283_v63  ;;  %v1247_v12 = vmul.f32 %v1055_v1, %v735_v36  ;;  %v3387_v40 = vcvt.s32.f32 %v651_v60  ;;  %v3389_v18 = vcvt.s32.f32 %v652_v54  ;;  %v506_v17 = vld [vmem:[%s2705_s14 + $0xf8] sm:$0xff] }
 0x12f   : > { %1540 = vst [vmem:[%s2730_s15 + $0xc8] sm:$0xff] %v1412_v50  ;;  %v1669_v52 = vmul.f32 %v1605_v5, %v1284_v59  ;;  %v1248_v57 = vmul.f32 %v1056_v4, %v736_v0  ;;  %v1375_v34 = vmul.f32 %v1183_v42, %v735_v36  ;;  %v1376_v35 = vmul.f32 %v1184_v27, %v736_v0  ;;  %v2241_v37 = vld [vmem:[%s2726_s26 + $0x38] sm:$0xff] }
 0x130   : > { %v1719_v14 = vadd.f32 %v1718_v39, %v1668_v3  ;;  %v1311_v41 = vadd.f32 %v1247_v12, %v527_v28  ;;  %v811_v51 = vmul.f32 0.05, %v507_v46  ;;  %v812_v58 = vmul.f32 0.05, %v508_v10  ;;  %v3413_v3 = vld [vmem:[%s2726_s26 + $0x70] sm:$0xff] }
 0x131   : > { %v1756_v30 = vadd.f32 %v1755_v47, %v1669_v52  ;;  %v1312_v16 = vadd.f32 %v1248_v57, %v528_v7  ;;  %v1439_v48 = vadd.f32 %v1375_v34, %v591_v45  ;;  %v1440_v8 = vadd.f32 %v1376_v35, %v592_v20 }
 0x132   : > { %v1720_v62 = vadd.f32 %v1719_v14, %v1670_v31  ;;  %1503 = vst [vmem:[%s2728_s11 + $0x1a0] sm:$0xff] %v1311_v41  ;;  %v1035_v61 = vsub.f32 %v926_v9, %v811_v51  ;;  %v1036_v23 = vsub.f32 %v926_v9, %v812_v58  ;;  %v1099_v63 = vsub.f32 1.0, %v571_v21  ;;  %v505_v31 = vld [vmem:[%s2705_s14 + $0xf0] sm:$0xff] }
 0x133   : > { %v1757_v59 = vadd.f32 %v1756_v30, %v1671_v22  ;;  %1504 = vst [vmem:[%s2728_s11 + $0x1a8] sm:$0xff] %v1312_v16  ;;  %v1632_v39 = vmul.f32 %v1439_v48, %v735_v36  ;;  %v1633_v28 = vmul.f32 %v1440_v8, %v736_v0  ;;  %v1100_v47 = vsub.f32 1.0, %v572_v29  ;;  %v569_v0 = vld [vmem:[%s2712_s12 + $0xf0] sm:$0xff] }
 0x134   : > { %1567 = vst [vmem:[%s2730_s15 + $0x1a0] sm:$0xff] %v1439_v48  ;;  %v1163_v7 = vmul.f32 0.00016666666, %v1099_v63  ;;  %v1227_v45 = vmul.f32 %v1035_v61, %v3387_v40  ;;  %v1228_v20 = vmul.f32 %v1036_v23, %v3389_v18  ;;  %v649_v50 = vunpack.c.3.s8 %v2240_v56  ;;  %v534_v48 = vld [vmem:[%s2705_s14 + $0x1d8] sm:$0xff]  ;;  %v597_v23 = vld [vmem:[%s2712_s12 + $0x1d0] sm:$0xff] }
 0x135   : > { %1568 = vst [vmem:[%s2730_s15 + $0x1a8] sm:$0xff] %v1440_v8  ;;  %v3403_v24 = vmul.f32 %v1632_v39, %v1311_v41  ;;  %v3405_v22 = vmul.f32 %v1633_v28, %v1312_v16  ;;  %v1164_v36 = vmul.f32 0.00016666666, %v1100_v47  ;;  %v650_v44 = vunpack.c.3.s8 %v2241_v37  ;;  %v3436_v37 = vld [vmem:[%s2726_s26 + $0x40] sm:$0xff] }
 0x136   : > { %v1291_v1 = vadd.f32 %v1227_v45, %v507_v46  ;;  %v1292_v2 = vadd.f32 %v1228_v20, %v508_v10  ;;  %v1355_v60 = vmul.f32 %v1163_v7, %v3387_v40  ;;  %v713_v54 = vcvt.s32.f32 %v649_v50  ;;  %v3420_v10 = vld [vmem:[%s2726_s26 + $0x78] sm:$0xff] }
 0x137   : > { %v1356_v5 = vmul.f32 %v1164_v36, %v3389_v18  ;;  %v714_v4 = vcvt.s32.f32 %v650_v44  ;;  %v809_v42 = vmul.f32 0.05, %v505_v31  ;;  %v810_v27 = vmul.f32 0.05, %v506_v17 }
 0x138   : > { %v1419_v12 = vadd.f32 %v1355_v60, %v571_v21  ;;  %1483 = vst [vmem:[%s2728_s11 + $0x100] sm:$0xff] %v1291_v1  ;;  %v1097_v52 = vsub.f32 1.0, %v569_v0  ;;  %v1098_v57 = vsub.f32 1.0, %v570_v11  ;;  %v3417_v46 = vadd.f32 %v1720_v62, %v3222_v43 }
 0x139   : > { %v1420_v34 = vadd.f32 %v1356_v5, %v572_v29  ;;  %1484 = vst [vmem:[%s2728_s11 + $0x108] sm:$0xff] %v1292_v2  ;;  %v1033_v35 = vsub.f32 %v921_v38, %v809_v42  ;;  %v1034_v9 = vsub.f32 %v921_v38, %v810_v27  ;;  %v1758_v14 = vadd.f32 %v1757_v59, %v3225_v33  ;;  %v533_v29 = vld [vmem:[%s2705_s14 + $0x1d0] sm:$0xff]  ;;  %v514_v38 = vld [vmem:[%s2705_s14 + $0x138] sm:$0xff] }
 0x13a   : > { %1547 = vst [vmem:[%s2730_s15 + $0x100] sm:$0xff] %v1419_v12  ;;  %v1612_v21 = vmul.f32 %v1419_v12, %v3387_v40  ;;  %v1161_v41 = vmul.f32 0.00016666666, %v1097_v52  ;;  %v1162_v51 = vmul.f32 0.00016666666, %v1098_v57  ;;  %v677_v43 = vunpack.c.1.s8 %v3413_v3  ;;  %v598_v40 = vld [vmem:[%s2712_s12 + $0x1d8] sm:$0xff] }
 0x13b   : > { %1548 = vst [vmem:[%s2730_s15 + $0x108] sm:$0xff] %v1420_v34  ;;  %v1613_v58 = vmul.f32 %v1420_v34, %v3389_v18  ;;  %v1225_v30 = vmul.f32 %v1033_v35, %v713_v54  ;;  %v1226_v16 = vmul.f32 %v1034_v9, %v714_v4  ;;  %v678_v8 = vunpack.c.1.s8 %v3420_v10  ;;  %v991_v18 = vpop.permute.xlu2 %990 }
 0x13c   : > { %v1676_v33 = vmul.f32 %v1612_v21, %v1291_v1  ;;  %v1353_v62 = vmul.f32 %v1161_v41, %v713_v54  ;;  %v1354_v61 = vmul.f32 %v1162_v51, %v714_v4  ;;  %v741_v63 = vcvt.s32.f32 %v677_v43  ;;  %v2243_v1 = vld [vmem:[%s2726_s26 + $0x48] sm:$0xff]  ;;  %v577_v21 = vld [vmem:[%s2712_s12 + $0x130] sm:$0xff]  ;;  %v578_v41 = vld [vmem:[%s2712_s12 + $0x138] sm:$0xff]  ;;  %s1820_s26 = sshll.u32 %s2728_s11, 4  ;;  %s3609_s26 = int_to_ptr.vmem [resolvable:$true] %s1820_s26 }
 0x13d   : > { %v1677_v59 = vmul.f32 %v1613_v58, %v1292_v2  ;;  %v1289_v39 = vadd.f32 %v1225_v30, %v505_v31  ;;  %v1290_v28 = vadd.f32 %v1226_v16, %v506_v17  ;;  %v742_v47 = vcvt.s32.f32 %v678_v8 }
 0x13e   : > { %v1417_v7 = vadd.f32 %v1353_v62, %v569_v0  ;;  %v1418_v45 = vadd.f32 %v1354_v61, %v570_v11  ;;  %v837_v20 = vmul.f32 0.05, %v533_v29  ;;  %v838_v56 = vmul.f32 0.05, %v534_v48  ;;  %v513_v11 = vld [vmem:[%s2705_s14 + $0x130] sm:$0xff] }
 0x13f   : > { %1481 = vst [vmem:[%s2728_s11 + $0xf0] sm:$0xff] %v1289_v39  ;;  %v1125_v50 = vsub.f32 1.0, %v597_v23  ;;  %v1126_v36 = vsub.f32 1.0, %v598_v40  ;;  %v657_v44 = vunpack.c.3.s8 %v3436_v37  ;;  %v658_v31 = vunpack.c.3.s8 %v2243_v1 }
 0x140   : > { %1482 = vst [vmem:[%s2728_s11 + $0xf8] sm:$0xff] %v1290_v28  ;;  %v1610_v17 = vmul.f32 %v1417_v7, %v713_v54  ;;  %v1611_v2 = vmul.f32 %v1418_v45, %v714_v4  ;;  %v1061_v0 = vsub.f32 %v991_v18, %v837_v20  ;;  %v1062_v60 = vsub.f32 %v991_v18, %v838_v56  ;;  %v941_v54 = vpop.permute.xlu1 %940 }
 0x141   : > { %1545 = vst [vmem:[%s2730_s15 + $0xf0] sm:$0xff] %v1417_v7  ;;  %v1189_v5 = vmul.f32 0.00016666666, %v1125_v50  ;;  %v1190_v42 = vmul.f32 0.00016666666, %v1126_v36  ;;  %v3444_v27 = vcvt.s32.f32 %v657_v44  ;;  %v3446_v12 = vcvt.s32.f32 %v658_v31 }
 0x142   : > { %1546 = vst [vmem:[%s2730_s15 + $0xf8] sm:$0xff] %v1418_v45  ;;  %v1674_v52 = vmul.f32 %v1610_v17, %v1289_v39  ;;  %v1675_v57 = vmul.f32 %v1611_v2, %v1290_v28  ;;  %v1253_v34 = vmul.f32 %v1061_v0, %v741_v63  ;;  %v1254_v35 = vmul.f32 %v1062_v60, %v742_v47  ;;  %v576_v17 = vld [vmem:[%s2712_s12 + $0x128] sm:$0xff]  ;;  %v936_v60 = vpop.permute.xlu0 %935 }
 0x143   : > { %v1381_v4 = vmul.f32 %v1189_v5, %v741_v63  ;;  %v1382_v9 = vmul.f32 %v1190_v42, %v742_v47  ;;  %v817_v51 = vmul.f32 0.05, %v513_v11  ;;  %v818_v43 = vmul.f32 0.05, %v514_v38 }
 0x144   : > { %v1722_v58 = vadd.f32 %v3417_v46, %v1674_v52  ;;  %v1759_v30 = vadd.f32 %v1758_v14, %v1675_v57  ;;  %v1317_v16 = vadd.f32 %v1253_v34, %v533_v29  ;;  %v1318_v8 = vadd.f32 %v1254_v35, %v534_v48  ;;  %v511_v48 = vld [vmem:[%s2705_s14 + $0x120] sm:$0xff] }
 0x145   : > { %v1445_v62 = vadd.f32 %v1381_v4, %v597_v23  ;;  %v1446_v61 = vadd.f32 %v1382_v9, %v598_v40  ;;  %v1041_v39 = vsub.f32 %v941_v54, %v817_v51  ;;  %v1042_v28 = vsub.f32 %v941_v54, %v818_v43  ;;  %v575_v23 = vld [vmem:[%s2712_s12 + $0x120] sm:$0xff] }
 0x146   : > { %v1723_v18 = vadd.f32 %v1722_v58, %v1676_v33  ;;  %v1760_v7 = vadd.f32 %v1759_v30, %v1677_v59  ;;  %1509 = vst [vmem:[%s2728_s11 + $0x1d0] sm:$0xff] %v1317_v16  ;;  %v1105_v45 = vsub.f32 1.0, %v577_v21  ;;  %v1106_v20 = vsub.f32 1.0, %v578_v41  ;;  %v512_v33 = vld [vmem:[%s2705_s14 + $0x128] sm:$0xff] }
 0x147   : > { %1510 = vst [vmem:[%s2728_s11 + $0x1d8] sm:$0xff] %v1318_v8  ;;  %v1638_v56 = vmul.f32 %v1445_v62, %v741_v63  ;;  %v1639_v46 = vmul.f32 %v1446_v61, %v742_v47  ;;  %v1233_v14 = vmul.f32 %v1041_v39, %v3444_v27  ;;  %v1234_v29 = vmul.f32 %v1042_v28, %v3446_v12 }
 0x148   : > { %1573 = vst [vmem:[%s2730_s15 + $0x1d0] sm:$0xff] %v1445_v62  ;;  %v1169_v40 = vmul.f32 0.00016666666, %v1105_v45  ;;  %v1170_v50 = vmul.f32 0.00016666666, %v1106_v20  ;;  %v655_v59 = vunpack.c.2.s8 %v3436_v37  ;;  %v656_v36 = vunpack.c.2.s8 %v2243_v1  ;;  %v583_v62 = vld [vmem:[%s2712_s12 + $0x160] sm:$0xff] }
 0x149   : > { %1574 = vst [vmem:[%s2730_s15 + $0x1d8] sm:$0xff] %v1446_v61  ;;  %v3462_v44 = vmul.f32 %v1638_v56, %v1317_v16  ;;  %v3464_v63 = vmul.f32 %v1639_v46, %v1318_v8  ;;  %v1297_v47 = vadd.f32 %v1233_v14, %v513_v11  ;;  %v1298_v31 = vadd.f32 %v1234_v29, %v514_v38  ;;  %v520_v8 = vld [vmem:[%s2705_s14 + $0x168] sm:$0xff] }
 0x14a   : > { %v1361_v2 = vmul.f32 %v1169_v40, %v3444_v27  ;;  %v1362_v0 = vmul.f32 %v1170_v50, %v3446_v12  ;;  %v719_v5 = vcvt.s32.f32 %v655_v59  ;;  %v720_v42 = vcvt.s32.f32 %v656_v36  ;;  %v584_v61 = vld [vmem:[%s2712_s12 + $0x168] sm:$0xff] }
 0x14b   : > { %1489 = vst [vmem:[%s2728_s11 + $0x130] sm:$0xff] %v1297_v47  ;;  %v815_v37 = vmul.f32 0.05, %v511_v48  ;;  %v816_v1 = vmul.f32 0.05, %v512_v33  ;;  %v1103_v52 = vsub.f32 1.0, %v575_v23  ;;  %v1724_v57 = vadd.f32 %v1723_v18, %v3260_v19 }
 0x14c   : > { %v1425_v34 = vadd.f32 %v1361_v2, %v577_v21  ;;  %v1426_v11 = vadd.f32 %v1362_v0, %v578_v41  ;;  %1490 = vst [vmem:[%s2728_s11 + $0x138] sm:$0xff] %v1298_v31  ;;  %v1104_v38 = vsub.f32 1.0, %v576_v17  ;;  %v1761_v35 = vadd.f32 %v1760_v7, %v3263_v32  ;;  %v519_v21 = vld [vmem:[%s2705_s14 + $0x160] sm:$0xff] }
 0x14d   : > { %v1039_v54 = vsub.f32 %v936_v60, %v815_v37  ;;  %v1040_v4 = vsub.f32 %v936_v60, %v816_v1  ;;  %v1167_v9 = vmul.f32 0.00016666666, %v1103_v52  ;;  %v663_v51 = vunpack.c.2.s8 %v3268_v53 }
 0x14e   : > { %1553 = vst [vmem:[%s2730_s15 + $0x130] sm:$0xff] %v1425_v34  ;;  %v1618_v43 = vmul.f32 %v1425_v34, %v3444_v27  ;;  %v1619_v19 = vmul.f32 %v1426_v11, %v3446_v12  ;;  %v1168_v58 = vmul.f32 0.00016666666, %v1104_v38  ;;  %v664_v41 = vunpack.c.2.s8 %v3276_v25  ;;  %v956_v27 = vpop.permute.xlu1 %955 }
 0x14f   : > { %1554 = vst [vmem:[%s2730_s15 + $0x138] sm:$0xff] %v1426_v11  ;;  %v1231_v30 = vmul.f32 %v1039_v54, %v719_v5  ;;  %v1232_v16 = vmul.f32 %v1040_v4, %v720_v42  ;;  %v1359_v32 = vmul.f32 %v1167_v9, %v719_v5  ;;  %v727_v39 = vcvt.s32.f32 %v663_v51  ;;  %v951_v11 = vpop.permute.xlu0 %950  ;;  %v582_v4 = vld [vmem:[%s2712_s12 + $0x158] sm:$0xff] }
 0x150   : > { %v1682_v28 = vmul.f32 %v1618_v43, %v1297_v47  ;;  %v1683_v18 = vmul.f32 %v1619_v19, %v1298_v31  ;;  %v1360_v7 = vmul.f32 %v1168_v58, %v720_v42  ;;  %v728_v12 = vcvt.s32.f32 %v664_v41  ;;  %v517_v47 = vld [vmem:[%s2705_s14 + $0x150] sm:$0xff] }
 0x151   : > { %v1295_v45 = vadd.f32 %v1231_v30, %v511_v48  ;;  %v1296_v20 = vadd.f32 %v1232_v16, %v512_v33  ;;  %v1423_v56 = vadd.f32 %v1359_v32, %v575_v23  ;;  %v823_v46 = vmul.f32 0.05, %v519_v21 }
 0x152   : > { %v1424_v14 = vadd.f32 %v1360_v7, %v576_v17  ;;  %v824_v29 = vmul.f32 0.05, %v520_v8  ;;  %v1111_v40 = vsub.f32 1.0, %v583_v62  ;;  %v1112_v50 = vsub.f32 1.0, %v584_v61  ;;  %v518_v17 = vld [vmem:[%s2705_s14 + $0x158] sm:$0xff] }
 0x153   : > { %1487 = vst [vmem:[%s2728_s11 + $0x120] sm:$0xff] %v1295_v45  ;;  %v1616_v59 = vmul.f32 %v1423_v56, %v719_v5  ;;  %v1047_v36 = vsub.f32 %v956_v27, %v823_v46  ;;  %v661_v31 = vunpack.c.1.s8 %v3268_v53  ;;  %v662_v2 = vunpack.c.1.s8 %v3276_v25 }
 0x154   : > { %1488 = vst [vmem:[%s2728_s11 + $0x128] sm:$0xff] %v1296_v20  ;;  %v1617_v48 = vmul.f32 %v1424_v14, %v720_v42  ;;  %v1048_v23 = vsub.f32 %v956_v27, %v824_v29  ;;  %v1175_v33 = vmul.f32 0.00016666666, %v1111_v40  ;;  %v1176_v0 = vmul.f32 0.00016666666, %v1112_v50  ;;  %v581_v42 = vld [vmem:[%s2712_s12 + $0x150] sm:$0xff] }
 0x155   : > { %1551 = vst [vmem:[%s2730_s15 + $0x120] sm:$0xff] %v1423_v56  ;;  %v1680_v60 = vmul.f32 %v1616_v59, %v1295_v45  ;;  %v1239_v37 = vmul.f32 %v1047_v36, %v727_v39  ;;  %v725_v1 = vcvt.s32.f32 %v661_v31  ;;  %v3490_v5 = vcvt.s32.f32 %v662_v2  ;;  %v590_v29 = vld [vmem:[%s2712_s12 + $0x198] sm:$0xff] }
 0x156   : > { %1552 = vst [vmem:[%s2730_s15 + $0x128] sm:$0xff] %v1424_v14  ;;  %v1681_v52 = vmul.f32 %v1617_v48, %v1296_v20  ;;  %v1240_v53 = vmul.f32 %v1048_v23, %v728_v12  ;;  %v1367_v34 = vmul.f32 %v1175_v33, %v727_v39  ;;  %v1368_v25 = vmul.f32 %v1176_v0, %v728_v12  ;;  %v526_v20 = vld [vmem:[%s2705_s14 + $0x198] sm:$0xff]  ;;  %v971_v59 = vpop.permute.xlu1 %970 }
 0x157   : > { %v1725_v38 = vadd.f32 %v1724_v57, %v1680_v60  ;;  %v1303_v54 = vadd.f32 %v1239_v37, %v519_v21  ;;  %v821_v9 = vmul.f32 0.05, %v517_v47  ;;  %v822_v51 = vmul.f32 0.05, %v518_v17 }
 0x158   : > { %v1762_v43 = vadd.f32 %v1761_v35, %v1681_v52  ;;  %v1304_v19 = vadd.f32 %v1240_v53, %v520_v8  ;;  %v1431_v58 = vadd.f32 %v1367_v34, %v583_v62  ;;  %v1432_v41 = vadd.f32 %v1368_v25, %v584_v61 }
 0x159   : > { %v1726_v30 = vadd.f32 %v1725_v38, %v1682_v28  ;;  %1495 = vst [vmem:[%s2728_s11 + $0x160] sm:$0xff] %v1303_v54  ;;  %v1045_v16 = vsub.f32 %v951_v11, %v821_v9  ;;  %v1046_v32 = vsub.f32 %v951_v11, %v822_v51  ;;  %v1109_v7 = vsub.f32 1.0, %v581_v42  ;;  %v525_v28 = vld [vmem:[%s2705_s14 + $0x190] sm:$0xff] }
 0x15a   : > { %v1763_v27 = vadd.f32 %v1762_v43, %v1683_v18  ;;  %1496 = vst [vmem:[%s2728_s11 + $0x168] sm:$0xff] %v1304_v19  ;;  %v1624_v57 = vmul.f32 %v1431_v58, %v727_v39  ;;  %v1625_v21 = vmul.f32 %v1432_v41, %v728_v12  ;;  %v1110_v45 = vsub.f32 1.0, %v582_v4  ;;  %v589_v39 = vld [vmem:[%s2712_s12 + $0x190] sm:$0xff] }
 0x15b   : > { %1559 = vst [vmem:[%s2730_s15 + $0x160] sm:$0xff] %v1431_v58  ;;  %v1173_v35 = vmul.f32 0.00016666666, %v1109_v7  ;;  %v1237_v8 = vmul.f32 %v1045_v16, %v725_v1  ;;  %v1238_v62 = vmul.f32 %v1046_v32, %v3490_v5  ;;  %v1727_v61 = vadd.f32 %v1726_v30, %v3308_v55  ;;  %v587_v58 = vld [vmem:[%s2712_s12 + $0x180] sm:$0xff]  ;;  %v966_v7 = vpop.permute.xlu0 %965 }
 0x15c   : > { %1560 = vst [vmem:[%s2730_s15 + $0x168] sm:$0xff] %v1432_v41  ;;  %v1688_v56 = vmul.f32 %v1624_v57, %v1303_v54  ;;  %v1689_v46 = vmul.f32 %v1625_v21, %v1304_v19  ;;  %v1174_v18 = vmul.f32 0.00016666666, %v1110_v45  ;;  %v1764_v14 = vadd.f32 %v1763_v27, %v3310_v49  ;;  %v523_v54 = vld [vmem:[%s2705_s14 + $0x180] sm:$0xff]  ;;  %v524_v19 = vld [vmem:[%s2705_s14 + $0x188] sm:$0xff] }
 0x15d   : > { %v1301_v12 = vadd.f32 %v1237_v8, %v517_v47  ;;  %v1302_v40 = vadd.f32 %v1238_v62, %v518_v17  ;;  %v1365_v50 = vmul.f32 %v1173_v35, %v725_v1  ;;  %v669_v36 = vunpack.c.1.s8 %v3361_v13  ;;  %v588_v41 = vld [vmem:[%s2712_s12 + $0x188] sm:$0xff] }
 0x15e   : > { %v1366_v55 = vmul.f32 %v1174_v18, %v3490_v5  ;;  %v670_v31 = vunpack.c.1.s8 %v3364_v15  ;;  %v829_v2 = vmul.f32 0.05, %v525_v28  ;;  %v830_v48 = vmul.f32 0.05, %v526_v20 }
 0x15f   : > { %v1429_v23 = vadd.f32 %v1365_v50, %v581_v42  ;;  %1493 = vst [vmem:[%s2728_s11 + $0x150] sm:$0xff] %v1301_v12  ;;  %v733_v49 = vcvt.s32.f32 %v669_v36  ;;  %v1117_v33 = vsub.f32 1.0, %v589_v39  ;;  %v1118_v0 = vsub.f32 1.0, %v590_v29 }
 0x160   : > { %v1430_v47 = vadd.f32 %v1366_v55, %v582_v4  ;;  %1494 = vst [vmem:[%s2728_s11 + $0x158] sm:$0xff] %v1302_v40  ;;  %v734_v17 = vcvt.s32.f32 %v670_v31  ;;  %v1053_v60 = vsub.f32 %v971_v59, %v829_v2  ;;  %v1054_v37 = vsub.f32 %v971_v59, %v830_v48  ;;  %v531_v59 = vld [vmem:[%s2705_s14 + $0x1c0] sm:$0xff] }
 0x161   : > { %1557 = vst [vmem:[%s2730_s15 + $0x150] sm:$0xff] %v1429_v23  ;;  %v1622_v52 = vmul.f32 %v1429_v23, %v725_v1  ;;  %v1181_v53 = vmul.f32 0.00016666666, %v1117_v33  ;;  %v1182_v34 = vmul.f32 0.00016666666, %v1118_v0  ;;  %v667_v25 = vunpack.c.0.s8 %v3361_v13  ;;  %v595_v33 = vld [vmem:[%s2712_s12 + $0x1c0] sm:$0xff] }
 0x162   : > { %1558 = vst [vmem:[%s2730_s15 + $0x158] sm:$0xff] %v1430_v47  ;;  %v1623_v11 = vmul.f32 %v1430_v47, %v3490_v5  ;;  %v1245_v42 = vmul.f32 %v1053_v60, %v733_v49  ;;  %v1246_v38 = vmul.f32 %v1054_v37, %v734_v17  ;;  %v668_v4 = vunpack.c.0.s8 %v3364_v15  ;;  %v596_v47 = vld [vmem:[%s2712_s12 + $0x1c8] sm:$0xff] }
 0x163   : > { %v1686_v9 = vmul.f32 %v1622_v52, %v1301_v12  ;;  %v1373_v51 = vmul.f32 %v1181_v53, %v733_v49  ;;  %v1374_v43 = vmul.f32 %v1182_v34, %v734_v17  ;;  %v731_v1 = vcvt.s32.f32 %v667_v25 }
 0x164   : > { %v1687_v30 = vmul.f32 %v1623_v11, %v1302_v40  ;;  %v1309_v16 = vadd.f32 %v1245_v42, %v525_v28  ;;  %v1310_v32 = vadd.f32 %v1246_v38, %v526_v20  ;;  %v732_v27 = vcvt.s32.f32 %v668_v4 }
 0x165   : > { %v1728_v5 = vadd.f32 %v1727_v61, %v1686_v9  ;;  %v1437_v57 = vadd.f32 %v1373_v51, %v589_v39  ;;  %v1438_v21 = vadd.f32 %v1374_v43, %v590_v29  ;;  %v827_v45 = vmul.f32 0.05, %v523_v54 }
 0x166   : > { %v1765_v35 = vadd.f32 %v1764_v14, %v1687_v30  ;;  %1501 = vst [vmem:[%s2728_s11 + $0x190] sm:$0xff] %v1309_v16  ;;  %v828_v8 = vmul.f32 0.05, %v524_v19  ;;  %v1115_v62 = vsub.f32 1.0, %v587_v58  ;;  %v1116_v18 = vsub.f32 1.0, %v588_v41 }
 0x167   : > { %v1729_v12 = vadd.f32 %v1728_v5, %v1688_v56  ;;  %1502 = vst [vmem:[%s2728_s11 + $0x198] sm:$0xff] %v1310_v32  ;;  %v1630_v40 = vmul.f32 %v1437_v57, %v733_v49  ;;  %v1631_v28 = vmul.f32 %v1438_v21, %v734_v17  ;;  %v1051_v20 = vsub.f32 %v966_v7, %v827_v45  ;;  %v532_v56 = vld [vmem:[%s2705_s14 + $0x1c8] sm:$0xff]  ;;  %v986_v49 = vpop.permute.xlu1 %985  ;;  %v593_v5 = vld [vmem:[%s2712_s12 + $0x1b0] sm:$0xff] }
 0x168   : > { %v1766_v50 = vadd.f32 %v1765_v35, %v1689_v46  ;;  %1565 = vst [vmem:[%s2730_s15 + $0x190] sm:$0xff] %v1437_v57  ;;  %v1052_v61 = vsub.f32 %v966_v7, %v828_v8  ;;  %v1179_v39 = vmul.f32 0.00016666666, %v1115_v62  ;;  %v1180_v29 = vmul.f32 0.00016666666, %v1116_v18  ;;  %v529_v7 = vld [vmem:[%s2705_s14 + $0x1b0] sm:$0xff]  ;;  %v981_v18 = vpop.permute.xlu0 %980 }
 0x169   : > { %1566 = vst [vmem:[%s2730_s15 + $0x198] sm:$0xff] %v1438_v21  ;;  %v1694_v14 = vmul.f32 %v1630_v40, %v1309_v16  ;;  %v1695_v36 = vmul.f32 %v1631_v28, %v1310_v32  ;;  %v1243_v55 = vmul.f32 %v1051_v20, %v731_v1  ;;  %v1730_v31 = vadd.f32 %v1729_v12, %v3353_v6  ;;  %v594_v21 = vld [vmem:[%s2712_s12 + $0x1b8] sm:$0xff] }
 0x16a   : > { %v1244_v2 = vmul.f32 %v1052_v61, %v732_v27  ;;  %v1371_v48 = vmul.f32 %v1179_v39, %v731_v1  ;;  %v1372_v23 = vmul.f32 %v1180_v29, %v732_v27  ;;  %v1767_v46 = vadd.f32 %v1766_v50, %v3355_v26 }
 0x16b   : > { %v1307_v0 = vadd.f32 %v1243_v55, %v523_v54  ;;  %v675_v17 = vunpack.c.0.s8 %v3413_v3  ;;  %v676_v60 = vunpack.c.0.s8 %v3420_v10  ;;  %v835_v37 = vmul.f32 0.05, %v531_v59 }
 0x16c   : > { %v1308_v52 = vadd.f32 %v1244_v2, %v524_v19  ;;  %v1435_v6 = vadd.f32 %v1371_v48, %v587_v58  ;;  %v1436_v53 = vadd.f32 %v1372_v23, %v588_v41  ;;  %v836_v34 = vmul.f32 0.05, %v532_v56 }
 0x16d   : > { %1499 = vst [vmem:[%s2728_s11 + $0x180] sm:$0xff] %v1307_v0  ;;  %v739_v25 = vcvt.s32.f32 %v675_v17  ;;  %v740_v11 = vcvt.s32.f32 %v676_v60  ;;  %v1059_v26 = vsub.f32 %v986_v49, %v835_v37  ;;  %v1123_v42 = vsub.f32 1.0, %v595_v33 }
 0x16e   : > { %1500 = vst [vmem:[%s2728_s11 + $0x188] sm:$0xff] %v1308_v52  ;;  %v1628_v38 = vmul.f32 %v1435_v6, %v731_v1  ;;  %v1629_v54 = vmul.f32 %v1436_v53, %v732_v27  ;;  %v1060_v4 = vsub.f32 %v986_v49, %v836_v34  ;;  %v1124_v9 = vsub.f32 1.0, %v596_v47  ;;  %v530_v1 = vld [vmem:[%s2705_s14 + $0x1b8] sm:$0xff] }
 0x16f   : > { %1563 = vst [vmem:[%s2730_s15 + $0x180] sm:$0xff] %v1435_v6  ;;  %v1187_v51 = vmul.f32 0.00016666666, %v1123_v42  ;;  %v1251_v43 = vmul.f32 %v1059_v26, %v739_v25  ;;  %v673_v19 = vunpack.c.3.s8 %v3361_v13  ;;  %v674_v58 = vunpack.c.3.s8 %v3364_v15  ;;  %v1001_v37 = vpop.permute.xlu1 %1000  ;;  %v602_v6 = vld [vmem:[%s2712_s12 + $0x1f8] sm:$0xff] }
 0x170   : > { %1564 = vst [vmem:[%s2730_s15 + $0x188] sm:$0xff] %v1436_v53  ;;  %v1692_v41 = vmul.f32 %v1628_v38, %v1307_v0  ;;  %v1693_v30 = vmul.f32 %v1629_v54, %v1308_v52  ;;  %v1188_v16 = vmul.f32 0.00016666666, %v1124_v9  ;;  %v1252_v32 = vmul.f32 %v1060_v4, %v740_v11  ;;  %v601_v52 = vld [vmem:[%s2712_s12 + $0x1f0] sm:$0xff] }
 0x171   : > { %v1315_v27 = vadd.f32 %v1251_v43, %v531_v59  ;;  %v1379_v57 = vmul.f32 %v1187_v51, %v739_v25  ;;  %v737_v45 = vcvt.s32.f32 %v673_v19  ;;  %v738_v35 = vcvt.s32.f32 %v674_v58 }
 0x172   : > { %v1731_v8 = vadd.f32 %v1730_v31, %v1692_v41  ;;  %v1768_v13 = vadd.f32 %v1767_v46, %v1693_v30  ;;  %v1316_v62 = vadd.f32 %v1252_v32, %v532_v56  ;;  %v1380_v15 = vmul.f32 %v1188_v16, %v740_v11  ;;  %v535_v41 = vld [vmem:[%s2705_s14 + $0x1e0] sm:$0xff] }
 0x173   : > { %v1443_v12 = vadd.f32 %v1379_v57, %v595_v33  ;;  %1507 = vst [vmem:[%s2728_s11 + $0x1c0] sm:$0xff] %v1315_v27  ;;  %v833_v40 = vmul.f32 0.05, %v529_v7  ;;  %v834_v28 = vmul.f32 0.05, %v530_v1  ;;  %v1121_v20 = vsub.f32 1.0, %v593_v5 }
 0x174   : > { %v1732_v50 = vadd.f32 %v1731_v8, %v1694_v14  ;;  %v1769_v61 = vadd.f32 %v1768_v13, %v1695_v36  ;;  %v1444_v39 = vadd.f32 %v1380_v15, %v596_v47  ;;  %1508 = vst [vmem:[%s2728_s11 + $0x1c8] sm:$0xff] %v1316_v62  ;;  %v1122_v29 = vsub.f32 1.0, %v594_v21  ;;  %v537_v14 = vld [vmem:[%s2705_s14 + $0x1f0] sm:$0xff]  ;;  %v538_v47 = vld [vmem:[%s2705_s14 + $0x1f8] sm:$0xff]  ;;  %v996_v15 = vpop.permute.xlu0 %995 }
 0x175   : > { %1571 = vst [vmem:[%s2730_s15 + $0x1c0] sm:$0xff] %v1443_v12  ;;  %v1636_v59 = vmul.f32 %v1443_v12, %v739_v25  ;;  %v1057_v55 = vsub.f32 %v981_v18, %v833_v40  ;;  %v1058_v31 = vsub.f32 %v981_v18, %v834_v28  ;;  %v1185_v56 = vmul.f32 0.00016666666, %v1121_v20  ;;  %v600_v18 = vld [vmem:[%s2712_s12 + $0x1e8] sm:$0xff] }
 0x176   : > { %1572 = vst [vmem:[%s2730_s15 + $0x1c8] sm:$0xff] %v1444_v39  ;;  %v1637_v2 = vmul.f32 %v1444_v39, %v740_v11  ;;  %v1186_v48 = vmul.f32 0.00016666666, %v1122_v29  ;;  %v1733_v23 = vadd.f32 %v1732_v50, %v3403_v24  ;;  %v1770_v46 = vadd.f32 %v1769_v61, %v3405_v22 }
 0x177   : > { %v1700_v36 = vmul.f32 %v1636_v59, %v1315_v27  ;;  %v1249_v49 = vmul.f32 %v1057_v55, %v737_v45  ;;  %v1250_v33 = vmul.f32 %v1058_v31, %v738_v35  ;;  %v1377_v0 = vmul.f32 %v1185_v56, %v737_v45  ;;  %v536_v27 = vld [vmem:[%s2705_s14 + $0x1e8] sm:$0xff] }
 0x178   : > { %v1701_v17 = vmul.f32 %v1637_v2, %v1316_v62  ;;  %v1378_v60 = vmul.f32 %v1186_v48, %v738_v35  ;;  %v681_v53 = vunpack.c.3.s8 %v3413_v3  ;;  %v682_v24 = vunpack.c.3.s8 %v3420_v10 }
 0x179   : > { %v1313_v22 = vadd.f32 %v1249_v49, %v529_v7  ;;  %v1314_v34 = vadd.f32 %v1250_v33, %v530_v1  ;;  %v1441_v25 = vadd.f32 %v1377_v0, %v593_v5  ;;  %v841_v11 = vmul.f32 0.05, %v537_v14 }
 0x17a   : > { %v1442_v26 = vadd.f32 %v1378_v60, %v594_v21  ;;  %v3554_v42 = vcvt.s32.f32 %v681_v53  ;;  %v3556_v38 = vcvt.s32.f32 %v682_v24  ;;  %v842_v54 = vmul.f32 0.05, %v538_v47 }
 0x17b   : > { %1505 = vst [vmem:[%s2728_s11 + $0x1b0] sm:$0xff] %v1313_v22  ;;  %v1634_v4 = vmul.f32 %v1441_v25, %v737_v45  ;;  %v1065_v9 = vsub.f32 %v1001_v37, %v841_v11  ;;  %v1129_v51 = vsub.f32 1.0, %v601_v52  ;;  %v1130_v43 = vsub.f32 1.0, %v602_v6  ;;  %v599_v45 = vld [vmem:[%s2712_s12 + $0x1e0] sm:$0xff]  ;;  %s3825_s12 = sld [smem:[#allocation56_spill]] }
 0x17c   : > { %1506 = vst [vmem:[%s2728_s11 + $0x1b8] sm:$0xff] %v1314_v34  ;;  %v1635_v19 = vmul.f32 %v1442_v26, %v738_v35  ;;  %v1066_v58 = vsub.f32 %v1001_v37, %v842_v54  ;;  %v679_v30 = vunpack.c.2.s8 %v3413_v3  ;;  %v680_v16 = vunpack.c.2.s8 %v3420_v10 }
 0x17d   : > { %1569 = vst [vmem:[%s2730_s15 + $0x1b0] sm:$0xff] %v1441_v25  ;;  %v1698_v32 = vmul.f32 %v1634_v4, %v1313_v22  ;;  %v1193_v7 = vmul.f32 0.00016666666, %v1129_v51  ;;  %v1194_v1 = vmul.f32 0.00016666666, %v1130_v43  ;;  %v1257_v5 = vmul.f32 %v1065_v9, %v3554_v42 }
 0x17e   : > { %1570 = vst [vmem:[%s2730_s15 + $0x1b8] sm:$0xff] %v1442_v26  ;;  %v1699_v57 = vmul.f32 %v1635_v19, %v1314_v34  ;;  %v1258_v21 = vmul.f32 %v1066_v58, %v3556_v38  ;;  %v743_v3 = vcvt.s32.f32 %v679_v30  ;;  %v744_v10 = vcvt.s32.f32 %v680_v16 }
 0x17f   : > { %v1734_v35 = vadd.f32 %v1733_v23, %v1698_v32  ;;  %v3575_v8 = vadd.f32 %v1257_v5, %v537_v14  ;;  %v1385_v13 = vmul.f32 %v1193_v7, %v3554_v42  ;;  %v1386_v62 = vmul.f32 %v1194_v1, %v3556_v38 }
 0x180   : > { %v1771_v12 = vadd.f32 %v1770_v46, %v1699_v57  ;;  %v3580_v40 = vadd.f32 %v1258_v21, %v538_v47  ;;  %v839_v28 = vmul.f32 0.05, %v535_v41  ;;  %v840_v20 = vmul.f32 0.05, %v536_v27 }
 0x181   : > { %v1735_v50 = vadd.f32 %v1734_v35, %v1700_v36  ;;  %v1449_v61 = vadd.f32 %v1385_v13, %v601_v52  ;;  %v1450_v39 = vadd.f32 %v1386_v62, %v602_v6  ;;  %1513 = vst [vmem:[%s2728_s11 + $0x1f0] sm:$0xff] %v3575_v8  ;;  %v1127_v29 = vsub.f32 1.0, %v599_v45  ;;  %s1839_s17 = scalar_lea.hbm %s3825_s12, %s2107_s6  ;;  %s3616_s6 = scalar_lea.sflag [#allocation10], %s1799_s8 }
 0x182   : > { %v1772_v59 = vadd.f32 %v1771_v12, %v1701_v17  ;;  %1514 = vst [vmem:[%s2728_s11 + $0x1f8] sm:$0xff] %v3580_v40  ;;  %v1063_v55 = vsub.f32 %v996_v15, %v839_v28  ;;  %v1064_v31 = vsub.f32 %v996_v15, %v840_v20  ;;  %v1128_v56 = vsub.f32 1.0, %v600_v18  ;;  %s1842_s13 = sshll.u32 %s1839_s17, 4  ;;  %s2320_s18 = scalar_lea.hbm %s3825_s12, 2048  ;;  %s3605_s13 = int_to_ptr.hbm [resolvable:$true] %s1842_s13 }
 0x183   : > { %1577 = vst [vmem:[%s2730_s15 + $0x1f0] sm:$0xff] %v1449_v61  ;;  %v1191_v2 = vmul.f32 0.00016666666, %v1127_v29  ;;  %v1736_v48 = vadd.f32 %v1735_v50, %v3462_v44  ;;  %v1643_v37 = vmul.f32 %v1450_v39, %v3556_v38 }
 0x184   : > { %1578 = vst [vmem:[%s2730_s15 + $0x1f8] sm:$0xff] %v1450_v39  ;;  %v1192_v23 = vmul.f32 0.00016666666, %v1128_v56  ;;  %v1255_v46 = vmul.f32 %v1063_v55, %v743_v3  ;;  %v1256_v14 = vmul.f32 %v1064_v31, %v744_v10  ;;  %v1773_v36 = vadd.f32 %v1772_v59, %v3464_v63 }
 0x185   : > { %v1383_v49 = vmul.f32 %v1191_v2, %v743_v3  ;;  %v1642_v63 = vmul.f32 %v1449_v61, %v3554_v42 }
 0x186   : > { %v1319_v44 = vadd.f32 %v1255_v46, %v535_v41  ;;  %v1320_v33 = vadd.f32 %v1256_v14, %v536_v27  ;;  %v1384_v0 = vmul.f32 %v1192_v23, %v744_v10 }
 0x187   : > { %v1447_v47 = vadd.f32 %v1383_v49, %v599_v45 }
 0x188   : > { %v1448_v17 = vadd.f32 %v1384_v0, %v600_v18  ;;  %1511 = vst [vmem:[%s2728_s11 + $0x1e0] sm:$0xff] %v1319_v44 }
 0x189   : > { %1512 = vst [vmem:[%s2728_s11 + $0x1e8] sm:$0xff] %v1320_v33  ;;  %v1640_v60 = vmul.f32 %v1447_v47, %v743_v3  ;;  %s2314_s11 = sshra.s32 %s3605_s13, 4  ;;  %s2315_s11 = int_to_ptr.hbm [resolvable:$true] %s2314_s11 }
 0x18a   : > { %1575 = vst [vmem:[%s2730_s15 + $0x1e0] sm:$0xff] %v1447_v47  ;;  %v1641_v52 = vmul.f32 %v1448_v17, %v744_v10  ;;  %s2316_s14 = scalar_lea.hbm %s2315_s11, 512  ;;  %p2321_p2 = scmp.lt.s32.totalorder %s2315_s11, %s3825_s12 }
 0x18b   : > { %1576 = vst [vmem:[%s2730_s15 + $0x1e8] sm:$0xff] %v1448_v17  ;;  %v1704_v6 = vmul.f32 %v1640_v60, %v1319_v44  ;;  %p2317_p11 = scmp.ne.s32.totalorder %s2315_s11, %s2316_s14  ;;  %p2322_p5 = scmp.lt.s32.totalorder %s2320_s18, %s2316_s14 }
 0x18c   : > { %v1705_v53 = vmul.f32 %v1641_v52, %v1320_v33 }
 0x18d   : > { %p2318_p12 = pnand %p2317_p11, %p2621_p9  ;;  %p2323_p3 = por %p2322_p5, %p2321_p2 }
 0x18f   : > { %p2319_p0 = pneg %p2318_p12 }
 0x191   : > { %p2324_p6 = pnand %p2323_p3, %p2319_p0 }
 0x193   : > { %2327 = shalt.err (!%p2324_p6)
}
 0x194   : > { %s2497_s15 = smov 256   ;;  %s2498_s4 = smov 512   ;;  %v1706_v24 = vmul.f32 %v1642_v63, %v3575_v8  ;;  %v1737_v22 = vadd.f32 %v1736_v48, %v1704_v6 }
 0x195   : > { %s2499_s8 = smov 16   ;;  %s1795_s23 = scalar_lea.sflag [#allocation4], %s2701_s5 }
 0x196   : > { %2125 = dma.vmem_to_hbm [thread:$0]  (%p2621_p9), %s3601_s24, 8192, %s3605_s13, %s3616_s6, %s2497_s15, %s2498_s4, %s2499_s8  }
 0x197   : > { %s2342_s11 = sshra.s32 %s3611_s10, 4  ;;  %s2348_s18 = scalar_lea.hbm %s3827_s9, 2048  ;;  %s2343_s11 = int_to_ptr.hbm [resolvable:$true] %s2342_s11 }
 0x198   : > { %s2344_s14 = scalar_lea.hbm %s2343_s11, 512  ;;  %p2349_p11 = scmp.lt.s32.totalorder %s2343_s11, %s3827_s9 }
 0x199   : > { %p2345_p7 = scmp.ne.s32.totalorder %s2343_s11, %s2344_s14  ;;  %p2350_p12 = scmp.lt.s32.totalorder %s2348_s18, %s2344_s14 }
 0x19b   : > { %p2346_p10 = pnand %p2345_p7, %p2621_p9  ;;  %p2351_p0 = por %p2350_p12, %p2349_p11 }
 0x19d   : > { %p2347_p8 = pneg %p2346_p10 }
 0x19f   : > { %p2352_p2 = pnand %p2351_p0, %p2347_p8 }
 0x1a1   : > { %2355 = shalt.err (!%p2352_p2)
}
 0x1a2   : > { %2124 = dma.vmem_to_hbm [thread:$0]  (%p2621_p9), %s3609_s26, 8192, %s3611_s10, %s1795_s23, %s2497_s15, %s2498_s4, %s2499_s8   ;;  %v1707_v34 = vmul.f32 %v1643_v37, %v3580_v40  ;;  %v1774_v25 = vadd.f32 %v1773_v36, %v1705_v53  ;;  %v1738_v11 = vadd.f32 %v1737_v22, %v1706_v24  ;;  %v1789_v16 = vlaneseq }
 0x1a3   : > { %s3829_s13 = sld [smem:[#allocation57_spill]]  ;;  %vm1785_vm1 = vcmask 1040384   ;;  %v1579_v32 = vld [vmem:[%s2732_s19] sm:$0x3]  ;;  %s1857_s27 = sshll.u32 %s2732_s19, 4  ;;  %s1858_s27 = int_to_ptr.vmem [resolvable:$true] %s1857_s27 }
 0x1a4   : > { %v1775_v26 = vadd.f32 %v1774_v25, %v1707_v34  ;;  %v1739_v42 = vrot.slane %v1738_v11, 4  ;;  %vm1791_vm2 = vcmp.lt.s32.totalorder %v1789_v16, 256 }
 0x1a6   : > { %v1776_v38 = vrot.slane %v1775_v26, 4  ;;  %v1740_v54 = vadd.f32 %v1739_v42, %v1738_v11 }
 0x1a8   : > { %v1777_v4 = vadd.f32 %v1776_v38, %v1775_v26  ;;  %v1741_v9 = vrot.slane %v1740_v54, 2 }
 0x1a9   : > { %s1855_s26 = scalar_lea.hbm %s3829_s13, %s2105_s30  ;;  %s2376_s23 = scalar_lea.hbm %s3829_s13, 4 }
 0x1aa   : > { %v1778_v51 = vrot.slane %v1777_v4, 2  ;;  %v1742_v43 = vadd.f32 %v1741_v9, %v1740_v54  ;;  %s1859_s15 = sshll.u32 %s1855_s26, 4  ;;  %s1860_s15 = int_to_ptr.hbm [resolvable:$true] %s1859_s15 }
 0x1ab   : > { %s2370_s28 = sshra.s32 %s1860_s15, 4  ;;  %s2371_s28 = int_to_ptr.hbm [resolvable:$true] %s2370_s28 }
 0x1ac   : > { %v1779_v19 = vadd.f32 %v1778_v51, %v1777_v4  ;;  %v1743_v41 = vrot.slane %v1742_v43, 1  ;;  %s2372_s4 = scalar_lea.hbm %s2371_s28, 2  ;;  %p2377_p6 = scmp.lt.s32.totalorder %s2371_s28, %s3829_s13 }
 0x1ad   : > { %p2373_p9 = scmp.ne.s32.totalorder %s2371_s28, %s2372_s4  ;;  %p2378_p7 = scmp.lt.s32.totalorder %s2376_s23, %s2372_s4 }
 0x1ae   : > { %v1780_v58 = vrot.slane %v1779_v19, 1  ;;  %v1744_v7 = vadd.f32 %v1743_v41, %v1742_v43 }
 0x1af   : > { %p2374_p5 = pnand %p2373_p9, %p2644_p1  ;;  %p2379_p10 = por %p2378_p7, %p2377_p6 }
 0x1b0   : > { %v1781_v30 = vadd.f32 %v1780_v58, %v1779_v19 }
 0x1b1   : > { %p2375_p3 = pneg %p2374_p5 }
 0x1b2   : > { %v1784_v1 = vrot.slane %v1781_v30, 7 }
 0x1b3   : > { %p2380_p8 = pnand %p2379_p10, %p2375_p3 }
 0x1b4   : > { %v1786_v5 = vsel %vm1785_vm1, %v1744_v7, %v1784_v1 }
 0x1b5   : > { %v1788_v27 = vadd.f32 %v1786_v5, %v1579_v32 }
 0x1b7   : > { %1793 = vst.msk [vmem:[%s2732_s19] sm:$0x3] %vm1791_vm2, %v1788_v27 }
 0x1b8   : > { %2383 = shalt.err (!%p2380_p8)
}
 0x1b9   : > { %2126 = dma.vmem_to_hbm [thread:$0]  (%p2644_p1), %s1858_s27, 32, %s1860_s15, %s3616_s6  }
 0x1ba PF: > { %s3831_s19 = sld [smem:[#allocation18_spill]]  ;;  %p2140_p11 = scmp.ge.s32.totalorder %s2490_s7, 2 }
 0x1bc   : > { %p2131_p12 = pnand %p2140_p11, %p2629_p13 }
 0x1be   : > { %p2132_p0 = pneg %p2131_p12 }
 0x1c0   : > { %s1871_s17 = sand.u32 1, %s3831_s19  }
 0x1c1   : > { %s1872_s18 = scalar_lea.sflag [#allocation4], %s1871_s17 }
 0x1c2   : > { %2437 = dma.done.wait (%p2132_p0), %s1872_s18, 8192  }
 0x1c3   : > { %2439 = vsyncadd (%p2132_p0), %s1872_s18, 4294959104  ;;  %s3833_s20 = sadd.s32 4294967294, %s2490_s7  }
 0x1c4   : > { %s1881_s21 = sand.u32 1, %s3833_s20  }
 0x1c5   : > { %s1882_s5 = scalar_lea.sflag [#allocation10], %s1881_s21 }
 0x1c6   : > { %2441 = dma.done.wait (%p2132_p0), %s1882_s5, 8192  }
 0x1c7   : > { %2443 = vsyncadd (%p2132_p0), %s1882_s5, 4294959104  ;;  %p2137_p1 = pnand %p2140_p11, %p2650_p4 }
 0x1c9   : > { %p2138_p2 = pneg %p2137_p1 }
 0x1cb   : > { %2445 = dma.done.wait (%p2138_p2), %s1882_s5, 32  }
 0x1cc   : > { %2447 = vsyncadd (%p2138_p2), %s1882_s5, 4294967264  ;;  %s29_s7 = sadd.s32 1, %s2490_s7   ;;  %s3835_s6 = sld [smem:[#allocation17_spill]] }
 0x1cd   : > { %p26_p9 = scmp.ge.s32.totalorder %s29_s7, 6   ;;  %s3836_s23 = sld [smem:[#allocation27_spill]] }
 0x1ce   : > { %s3837_s26 = sld [smem:[#allocation19_spill]]  ;;  %s3842_s21 = smov %s2454_s22 }
 0x1cf   : > { %s3838_s10 = sld [smem:[#allocation26_spill]]  ;;  %s3844_s24 = smov %s2466_s25 }
 0x1d0   : > { %s3839_s28 = sld [smem:[#allocation20_spill]]  ;;  %s3847_s27 = smov %s2482_s29 }
 0x1d1   : > { %s3840_s15 = sld [smem:[#allocation22_spill]] }
 0x1d2   : > { %s3841_s30 = sld [smem:[#allocation23_spill]]  ;;  %s3843_s22 = smov %s3835_s6 }
 0x1d3   :  { %28 = sbr.rel (!%p26_p9) target bundleno = 17 (0x11), region = 164 }
 0x1d4   : > { %s3845_s25 = smov %s3837_s26 }
 0x1d5   : > { %s3846_s26 = smov %s3838_s10 }
 0x1d7   : > { %s3848_s29 = smov %s3840_s15 }
 0x1d8   :  { %1898 = vsyncpa [#allocation3], 1 }
 0x1d9   :  { %1900 = vsyncpa [#allocation3 + $0x1], 1 }
 0x1da   :  { %1901 = vsyncpa [#allocation6], 1 }
 0x1db   :  { %1903 = vsyncpa [#allocation6 + $0x1], 1 }
 0x1dc   :  { %1904 = vsyncpa [#allocation4], 1 }
 0x1dd   :  { %1906 = vsyncpa [#allocation4 + $0x1], 1 }
 0x1de   :  { %1907 = vsyncpa [#allocation10], 1 }
 0x1df   :  { %1909 = vsyncpa [#allocation10 + $0x1], 1 }

</bundles_post_ra>
